<compile_context>
chip_gen: v7x
topology: tpu7x:2x2x1
jax: 0.10.0
libtpu: 0.0.40
codegen_flags: <defaults>
</compile_context>

<pallas_src>
import jax
import jax.numpy as jnp
from jax import lax
from jax.experimental import pallas as pl
from jax.experimental.pallas import tpu as pltpu

BN_EPS = 1e-5
CPAD = 128                      # class dim padded to one full lane tile
_VMEM = pl.BlockSpec(memory_space=pltpu.MemorySpace.VMEM)


def _round_up(x, m):
    return ((x + m - 1) // m) * m


# ------------------------- shared math (kernel + ref) ------------------------

def _mx(a, b):
    """bf16-in / f32-accumulate matmul (native MXU mode on v5e/v6e/v7x)."""
    return jnp.dot(a.astype(jnp.bfloat16), b.astype(jnp.bfloat16),
                   preferred_element_type=jnp.float32)


def _bn_relu(v, gamma, beta, inv_n, mask=None):
    """BatchNorm1d (training-mode batch stats) folded to one affine, then ReLU.

    Single-pass sum / sum-of-squares; var clamped at 0 (f32 cancellation can go
    slightly negative).  `mask` (rows < n_valid) keeps padded rows out of the
    statistics; padded rows never reach the outputs because A_hat / pool have
    zero columns there.
    """
    if mask is not None:
        v = v * mask
    mean = jnp.sum(v, axis=0, keepdims=True) * inv_n
    ex2 = jnp.sum(v * v, axis=0, keepdims=True) * inv_n
    var = jnp.maximum(ex2 - mean * mean, 0.0)
    scale = gamma * lax.rsqrt(var + BN_EPS)
    shift = beta - mean * scale
    return jnp.maximum(v * scale + shift, 0.0)


# --------------------------------- kernels -----------------------------------

def gin_branch_kernel(nvalid_ref,                          # scalar prefetch (SMEM)
                      a_ref, p_ref, x_ref,                 # per-branch blocks
                      c0w1_ref, c0w2_ref, c0v_ref,         # GIN conv layer 0
                      c1w1_ref, c1w2_ref, c1v_ref,         # GIN conv layer 1
                      lw0_ref, lw1_ref, lw2_ref, bsum_ref,  # per-layer linears
                      slab_ref):                           # (1, G, H + CPAD)
    b = pl.program_id(0)
    hidden = c0w2_ref.shape[1]
    nmax = a_ref.shape[1]

    n = nvalid_ref[b]                                      # true node count
    inv_n = 1.0 / n.astype(jnp.float32)
    mask = (lax.broadcasted_iota(jnp.int32, (nmax, 1), 0) < n).astype(jnp.float32)

    a = a_ref[0]          # (Nmax, Nmax) bf16   A_hat = A + I (eps = 0)
    pool = p_ref[0]       # (G, Nmax)    bf16   one-hot pooling matrix
    x = x_ref[0]          # (Nmax, F)    bf16

    def conv(h, w1_ref, w2_ref, v_ref):
        # v_ref rows: [b1, g1, be1, b2, g2, be2], each (1, hidden) f32.
        # Reassociated GIN: A_hat @ (h @ W1) -> aggregation is 128-lane dense.
        u = _mx(h, w1_ref[...])
        pre = _mx(a, u) + v_ref[0:1, :]
        h1 = _bn_relu(pre, v_ref[1:2, :], v_ref[2:3, :], inv_n, mask)
        h2 = _mx(h1, w2_ref[...]) + v_ref[3:4, :]
        return _bn_relu(h2, v_ref[4:5, :], v_ref[5:6, :], inv_n, mask)

    h1 = conv(x, c0w1_ref, c0w2_ref, c0v_ref)
    h2 = conv(h1, c1w1_ref, c1w2_ref, c1v_ref)

    # out = sum_i linears[i](global_add_pool(h_i));  dropout=0 -> identity.
    # Layer-0 term reassociated: (pool @ x) @ LW0 == pool @ (x @ LW0).
    # h1/h2 pooling fused into one 256-lane-wide matmul.
    y0 = _mx(x, lw0_ref[...])                                   # (Nmax, CPAD)
    p12 = _mx(pool, jnp.concatenate([h1, h2], axis=1))          # (G, 2*hidden)
    out = (_mx(pool, y0)
           + _mx(p12[:, :hidden], lw1_ref[...])
           + _mx(p12[:, hidden:], lw2_ref[...])
           + bsum_ref[...])                                     # (G, CPAD)
    # One lane-dense (G, hidden + CPAD) store: [pooled_last | padded logits].
    slab_ref[0] = jnp.concatenate([p12[:, hidden:], out], axis=1)


def disnet_kernel(slab_ref, dw_ref, db_ref, dist_ref):
    # distance = disnet(cat(pooled_last_1, pooled_last_2)) without the concat.
    hidden = dw_ref.shape[0] // 2
    hp1 = slab_ref[0, :, :hidden]
    hp2 = slab_ref[1, :, :hidden]
    dist_ref[...] = (_mx(hp1, dw_ref[:hidden, :])
                     + _mx(hp2, dw_ref[hidden:, :])
                     + db_ref[...])


# ---------------------------- graph-structure glue ---------------------------

def _build_adj(edge_index, n):
    # PyG convention: messages flow source (row 0) -> target (row 1).
    # train_eps=False -> eps=0 -> add identity.
    a = jnp.zeros((n, n), jnp.float32).at[edge_index[1], edge_index[0]].add(1.0)
    return a + jnp.eye(n, dtype=jnp.float32)


def _build_pool(batch, num_graphs):
    return jax.nn.one_hot(batch, num_graphs, dtype=jnp.float32).T   # (G, N)


def _pad2(m, rows, cols):
    return jnp.pad(m, ((0, rows - m.shape[0]), (0, cols - m.shape[1])))


# ------------------------------ forward wrapper ------------------------------

def distance_gin_forward(params, x1, ei1, batch1, g1, x2, ei2, batch2, g2):
    assert g1 == g2, "both graph batches must contain the same number of graphs"
    G = g1
    n1, n2 = x1.shape[0], x2.shape[0]
    F = x1.shape[1]
    H = params["convs"][0]["w2"].shape[1]
    C = params["linears"][0][0].shape[1]

    # Pad node counts to a common sublane-friendly size (bf16 packs 16 rows).
    nmax = _round_up(max(n1, n2), 16)

    a_st = jnp.stack([_pad2(_build_adj(ei1, n1), nmax, nmax),
                      _pad2(_build_adj(ei2, n2), nmax, nmax)]).astype(jnp.bfloat16)
    p_st = jnp.stack([_pad2(_build_pool(batch1, G), G, nmax),
                      _pad2(_build_pool(batch2, G), G, nmax)]).astype(jnp.bfloat16)
    x_st = jnp.stack([_pad2(x1, nmax, F),
                      _pad2(x2, nmax, F)]).astype(jnp.bfloat16)
    nvalid = jnp.array([n1, n2], dtype=jnp.int32)

    def pack_conv(p):
        vec = jnp.concatenate([p["b1"], p["g1"], p["be1"],
                               p["b2"], p["g2"], p["be2"]], axis=0)  # (6, H) f32
        return (p["w1"].astype(jnp.bfloat16),
                p["w2"].astype(jnp.bfloat16),
                vec.astype(jnp.float32))

    c0w1, c0w2, c0v = pack_conv(params["convs"][0])
    c1w1, c1w2, c1v = pack_conv(params["convs"][1])

    # Per-layer linears: pad class dim to one full lane tile; sum the biases.
    lwp = [jnp.pad(w, ((0, 0), (0, CPAD - C))).astype(jnp.bfloat16)
           for (w, _) in params["linears"]]
    bsum = jnp.pad(sum(b for (_, b) in params["linears"]),
                   ((0, 0), (0, CPAD - C))).astype(jnp.float32)

    dw, db = params["disnet"]
    dwp = jnp.pad(dw, ((0, 0), (0, CPAD - dw.shape[1]))).astype(jnp.bfloat16)
    dbp = jnp.pad(db, ((0, 0), (0, CPAD - db.shape[1]))).astype(jnp.float32)

    # ---- main kernel: grid over the two branches ("parallel" -> 2 TCs on v7x)
    const2 = lambda b, nv: (0, 0)
    branch3 = lambda b, nv: (b, 0, 0)
    slab = pl.pallas_call(
        gin_branch_kernel,
        out_shape=jax.ShapeDtypeStruct((2, G, H + CPAD), jnp.float32),
        grid_spec=pltpu.PrefetchScalarGridSpec(
            num_scalar_prefetch=1,
            grid=(2,),
            in_specs=[
                pl.BlockSpec((1, nmax, nmax), branch3),   # A_hat   (per branch)
                pl.BlockSpec((1, G, nmax), branch3),      # pool    (per branch)
                pl.BlockSpec((1, nmax, F), branch3),      # x       (per branch)
                pl.BlockSpec((F, H), const2),             # conv0 W1
                pl.BlockSpec((H, H), const2),             # conv0 W2
                pl.BlockSpec((6, H), const2),             # conv0 vec params
                pl.BlockSpec((H, H), const2),             # conv1 W1
                pl.BlockSpec((H, H), const2),             # conv1 W2
                pl.BlockSpec((6, H), const2),             # conv1 vec params
                pl.BlockSpec((F, CPAD), const2),          # linears[0] W (padded)
                pl.BlockSpec((H, CPAD), const2),          # linears[1] W (padded)
                pl.BlockSpec((H, CPAD), const2),          # linears[2] W (padded)
                pl.BlockSpec((1, CPAD), const2),          # summed biases
            ],
            out_specs=pl.BlockSpec((1, G, H + CPAD), branch3),
        ),
        compiler_params=pltpu.CompilerParams(
            dimension_semantics=("parallel",),
            # >> scoped defaults (~16/32 MiB), <= physical on every generation
            # (v7x has only 64 MiB per TC) -- budget against the scoped limit.
            vmem_limit_bytes=64 * 1024 * 1024),
    )(nvalid, a_st, p_st, x_st,
      c0w1, c0w2, c0v, c1w1, c1w2, c1v,
      lwp[0], lwp[1], lwp[2], bsum)

    # ---- tiny disnet kernel combining the two branches' pooled embeddings
    dist_pad = pl.pallas_call(
        disnet_kernel,
        out_shape=jax.ShapeDtypeStruct((G, CPAD), jnp.float32),
        in_specs=[_VMEM, _VMEM, _VMEM],
        out_specs=_VMEM,
    )(slab, dwp, dbp)

    distance = dist_pad[:, :1]
    out1 = slab[0, :, H:H + C]
    out2 = slab[1, :, H:H + C]
    return distance, out1, out2


# -------------------------- parameters (deterministic) -----------------------

def init_params(key, num_features, num_classes, hidden):
    def lin(k, fan_in, fan_out):
        k1, k2 = jax.random.split(k)
        w = jax.random.normal(k1, (fan_in, fan_out), jnp.float32) * 0.1
        b = jax.random.normal(k2, (1, fan_out), jnp.float32) * 0.1
        return w, b

    keys = jax.random.split(key, 16)
    params = {"convs": [], "linears": []}
    fin = num_features
    for i in range(2):                      # num_layers - 1 = 2 GIN conv layers
        w1, b1 = lin(keys[4 * i + 0], fin, hidden)
        w2, b2 = lin(keys[4 * i + 1], hidden, hidden)
        params["convs"].append(dict(
            w1=w1, b1=b1,
            g1=jnp.ones((1, hidden), jnp.float32),    # MLP BatchNorm1d
            be1=jnp.zeros((1, hidden), jnp.float32),
            w2=w2, b2=b2,
            g2=jnp.ones((1, hidden), jnp.float32),    # outer BatchNorm1d
            be2=jnp.zeros((1, hidden), jnp.float32)))
        fin = hidden
    dims = [num_features, hidden, hidden]
    for i in range(3):                      # self.linears
        params["linears"].append(lin(keys[8 + i], dims[i], num_classes))
    params["disnet"] = lin(keys[12], 2 * hidden, 1)
    return params


# --------------------------- pure-JAX reference ------------------------------
# Mirrors the kernel's arithmetic policy (bf16 at every MXU boundary, f32
# accumulate, reassociated A@(h@W1), folded BN affine) so the comparison
# isolates kernel plumbing rather than quantization / association choices.

def ref_branch(params, x, edge_index, batch, num_graphs):
    n = x.shape[0]
    a = _build_adj(edge_index, n).astype(jnp.bfloat16)
    pool = _build_pool(batch, num_graphs).astype(jnp.bfloat16)
    inv_n = 1.0 / n
    h_list = [x.astype(jnp.bfloat16)]
    for p in params["convs"]:
        u = _mx(h_list[-1], p["w1"])
        pre = _mx(a, u) + p["b1"]
        h1 = _bn_relu(pre, p["g1"], p["be1"], inv_n)
        h2 = _mx(h1, p["w2"]) + p["b2"]
        h_list.append(_bn_relu(h2, p["g2"], p["be2"], inv_n))
    (w0, b0), (w1, b1), (w2, b2) = params["linears"]
    out = (_mx(pool, _mx(h_list[0], w0))
           + _mx(_mx(pool, h_list[1]), w1)
           + _mx(_mx(pool, h_list[2]), w2)
           + b0 + b1 + b2)
    pooled_last = _mx(pool, h_list[2])
    return pooled_last, out


def ref_forward(params, x1, ei1, b1, g1, x2, ei2, b2, g2):
    hp1, o1 = ref_branch(params, x1, ei1, b1, g1)
    hp2, o2 = ref_branch(params, x2, ei2, b2, g2)
    wd, bd = params["disnet"]
    h = hp1.shape[1]
    d = _mx(hp1, wd[:h]) + _mx(hp2, wd[h:]) + bd
    return d, o1, o2


# ---------------------------------- main -------------------------------------

if __name__ == "__main__":
    F, H, C = 4, 128, 3        # num_features, hidden_units (lane-dense), classes
    n1, n2, G = 10, 12, 2      # nodes in graph-batch 1 / 2, graphs per batch

    key = jax.random.PRNGKey(0)
    kp, kx1, kx2 = jax.random.split(key, 3)
    params = init_params(kp, F, C, H)

    x1 = jax.random.normal(kx1, (n1, F), jnp.float32)
    x2 = jax.random.normal(kx2, (n2, F), jnp.float32)
    ei1 = jnp.array([[0, 1, 2, 3, 4, 5, 6, 7, 8, 9],
                     [1, 2, 3, 4, 0, 6, 7, 8, 9, 5]], dtype=jnp.int32)
    ei2 = jnp.array([[0, 1, 2, 3, 4, 5, 0, 6, 7, 8, 9, 10, 11, 6],
                     [1, 2, 3, 4, 5, 0, 2, 7, 8, 9, 10, 11, 6, 8]],
                    dtype=jnp.int32)
    batch1 = jnp.array([0] * 5 + [1] * 5, dtype=jnp.int32)
    batch2 = jnp.array([0] * 6 + [1] * 6, dtype=jnp.int32)

    distance, out1, out2 = distance_gin_forward(
        params, x1, ei1, batch1, G, x2, ei2, batch2, G)
    jax.block_until_ready((distance, out1, out2))

    # sanity check against a pure-JAX reference with matching precision policy
    rd, ro1, ro2 = ref_forward(params, x1, ei1, batch1, G, x2, ei2, batch2, G)
    assert distance.shape == (G, 1) and out1.shape == (G, C) and out2.shape == (G, C)
    assert jnp.allclose(distance, rd, atol=1e-2, rtol=1e-2)
    assert jnp.allclose(out1, ro1, atol=1e-2, rtol=1e-2)
    assert jnp.allclose(out2, ro2, atol=1e-2, rtol=1e-2)

    print("KERNEL_OK")
</pallas_src>

<mosaic_0001>
module attributes {stable_mosaic.version = 11 : i64} {
  func.func @gin_branch_kernel(%arg0: i32, %arg1: memref<2xi32, #tpu.memory_space<smem>>, %arg2: memref<1x16x16xbf16, #tpu.memory_space<vmem>>, %arg3: memref<1x2x16xbf16, #tpu.memory_space<vmem>>, %arg4: memref<1x16x4xbf16, #tpu.memory_space<vmem>>, %arg5: memref<4x128xbf16, #tpu.memory_space<vmem>>, %arg6: memref<128x128xbf16, #tpu.memory_space<vmem>>, %arg7: memref<6x128xf32, #tpu.memory_space<vmem>>, %arg8: memref<128x128xbf16, #tpu.memory_space<vmem>>, %arg9: memref<128x128xbf16, #tpu.memory_space<vmem>>, %arg10: memref<6x128xf32, #tpu.memory_space<vmem>>, %arg11: memref<4x128xbf16, #tpu.memory_space<vmem>>, %arg12: memref<128x128xbf16, #tpu.memory_space<vmem>>, %arg13: memref<128x128xbf16, #tpu.memory_space<vmem>>, %arg14: memref<1x128xf32, #tpu.memory_space<vmem>>, %arg15: memref<1x2x256xf32, #tpu.memory_space<vmem>>) attributes {dimension_semantics = [#tpu.dimension_semantics<parallel>], iteration_bounds = array<i64: 2>, scalar_prefetch = 1 : i64, scratch_operands = 0 : i64, tpu.core_type = #tpu.core_type<tc>, window_params = [{transform_indices = @transform_0, window_bounds = array<i64: 1, 16, 16>}, {transform_indices = @transform_1, window_bounds = array<i64: 1, 2, 16>}, {transform_indices = @transform_2, window_bounds = array<i64: 1, 16, 4>}, {pipeline_mode = #tpu.pipeline_mode<synchronous>, transform_indices = @transform_3, window_bounds = array<i64: 4, 128>}, {pipeline_mode = #tpu.pipeline_mode<synchronous>, transform_indices = @transform_4, window_bounds = array<i64: 128, 128>}, {pipeline_mode = #tpu.pipeline_mode<synchronous>, transform_indices = @transform_5, window_bounds = array<i64: 6, 128>}, {pipeline_mode = #tpu.pipeline_mode<synchronous>, transform_indices = @transform_6, window_bounds = array<i64: 128, 128>}, {pipeline_mode = #tpu.pipeline_mode<synchronous>, transform_indices = @transform_7, window_bounds = array<i64: 128, 128>}, {pipeline_mode = #tpu.pipeline_mode<synchronous>, transform_indices = @transform_8, window_bounds = array<i64: 6, 128>}, {pipeline_mode = #tpu.pipeline_mode<synchronous>, transform_indices = @transform_9, window_bounds = array<i64: 4, 128>}, {pipeline_mode = #tpu.pipeline_mode<synchronous>, transform_indices = @transform_10, window_bounds = array<i64: 128, 128>}, {pipeline_mode = #tpu.pipeline_mode<synchronous>, transform_indices = @transform_11, window_bounds = array<i64: 128, 128>}, {pipeline_mode = #tpu.pipeline_mode<synchronous>, transform_indices = @transform_12, window_bounds = array<i64: 1, 128>}, {transform_indices = @transform_13, window_bounds = array<i64: 1, 2, 256>}]} {
    %0 = arith.index_cast %arg0 : i32 to index
    %1 = memref.load %arg1[%0] : memref<2xi32, #tpu.memory_space<smem>>
    %2 = arith.sitofp %1 : i32 to f32
    %cst = arith.constant 1.000000e+00 : f32
    %3 = arith.divf %cst, %2 : f32
    %4 = tpu.iota {dimensions = array<i32: 0>} : vector<16x1xi32>
    %5 = vector.broadcast %1 : i32 to vector<16x1xi32>
    %6 = arith.cmpi slt, %4, %5 : vector<16x1xi32>
    %7 = arith.extui %6 : vector<16x1xi1> to vector<16x1xi32>
    %8 = arith.sitofp %7 : vector<16x1xi32> to vector<16x1xf32>
    %c0 = arith.constant 0 : index
    %c0_0 = arith.constant 0 : index
    %c0_1 = arith.constant 0 : index
    %9 = vector.load %arg2[%c0, %c0_0, %c0_1] : memref<1x16x16xbf16, #tpu.memory_space<vmem>>, vector<1x16x16xbf16>
    %10 = vector.shape_cast %9 : vector<1x16x16xbf16> to vector<16x16xbf16>
    %c0_2 = arith.constant 0 : index
    %c0_3 = arith.constant 0 : index
    %c0_4 = arith.constant 0 : index
    %11 = vector.load %arg3[%c0_2, %c0_3, %c0_4] : memref<1x2x16xbf16, #tpu.memory_space<vmem>>, vector<1x2x16xbf16>
    %12 = vector.shape_cast %11 : vector<1x2x16xbf16> to vector<2x16xbf16>
    %c0_5 = arith.constant 0 : index
    %c0_6 = arith.constant 0 : index
    %c0_7 = arith.constant 0 : index
    %13 = vector.load %arg4[%c0_5, %c0_6, %c0_7] : memref<1x16x4xbf16, #tpu.memory_space<vmem>>, vector<1x16x4xbf16>
    %14 = vector.shape_cast %13 : vector<1x16x4xbf16> to vector<16x4xbf16>
    %c0_8 = arith.constant 0 : index
    %c0_9 = arith.constant 0 : index
    %15 = vector.load %arg5[%c0_8, %c0_9] : memref<4x128xbf16, #tpu.memory_space<vmem>>, vector<4x128xbf16>
    %cst_10 = arith.constant dense<0.000000e+00> : vector<16x128xf32>
    %16 = tpu.matmul %14, %15, %cst_10 {dimension_numbers = #tpu.dot_dimension_numbers<[1], [0], [0], [1], [0, 0, 1, 1], [], []>} : vector<16x4xbf16>, vector<4x128xbf16>, vector<16x128xf32> -> vector<16x128xf32>
    %17 = arith.truncf %16 : vector<16x128xf32> to vector<16x128xbf16>
    %cst_11 = arith.constant dense<0.000000e+00> : vector<16x128xf32>
    %18 = tpu.matmul %10, %17, %cst_11 {dimension_numbers = #tpu.dot_dimension_numbers<[1], [0], [0], [1], [0, 0, 1, 1], [], []>} : vector<16x16xbf16>, vector<16x128xbf16>, vector<16x128xf32> -> vector<16x128xf32>
    %c0_12 = arith.constant 0 : index
    %c0_13 = arith.constant 0 : index
    %19 = vector.load %arg7[%c0_12, %c0_13] : memref<6x128xf32, #tpu.memory_space<vmem>>, vector<1x128xf32>
    %20 = vector.broadcast %19 : vector<1x128xf32> to vector<16x128xf32>
    %21 = arith.addf %18, %20 : vector<16x128xf32>
    %c1 = arith.constant 1 : index
    %c0_14 = arith.constant 0 : index
    %22 = vector.load %arg7[%c1, %c0_14] : memref<6x128xf32, #tpu.memory_space<vmem>>, vector<1x128xf32>
    %c2 = arith.constant 2 : index
    %c0_15 = arith.constant 0 : index
    %23 = vector.load %arg7[%c2, %c0_15] : memref<6x128xf32, #tpu.memory_space<vmem>>, vector<1x128xf32>
    %24 = vector.broadcast %8 : vector<16x1xf32> to vector<16x128xf32>
    %25 = arith.mulf %21, %24 : vector<16x128xf32>
    %cst_16 = arith.constant dense<0.000000e+00> : vector<128xf32>
    %26 = vector.multi_reduction <add>, %25, %cst_16 [0] : vector<16x128xf32> to vector<128xf32>
    %27 = vector.shape_cast %26 : vector<128xf32> to vector<1x128xf32>
    %28 = vector.broadcast %3 : f32 to vector<1x128xf32>
    %29 = arith.mulf %27, %28 : vector<1x128xf32>
    %30 = arith.mulf %25, %25 : vector<16x128xf32>
    %cst_17 = arith.constant dense<0.000000e+00> : vector<128xf32>
    %31 = vector.multi_reduction <add>, %30, %cst_17 [0] : vector<16x128xf32> to vector<128xf32>
    %32 = vector.shape_cast %31 : vector<128xf32> to vector<1x128xf32>
    %33 = vector.broadcast %3 : f32 to vector<1x128xf32>
    %34 = arith.mulf %32, %33 : vector<1x128xf32>
    %35 = arith.mulf %29, %29 : vector<1x128xf32>
    %36 = arith.subf %34, %35 : vector<1x128xf32>
    %cst_18 = arith.constant 0.000000e+00 : f32
    %37 = vector.broadcast %cst_18 : f32 to vector<1x128xf32>
    %38 = arith.maximumf %36, %37 : vector<1x128xf32>
    %cst_19 = arith.constant 9.99999974E-6 : f32
    %39 = vector.broadcast %cst_19 : f32 to vector<1x128xf32>
    %40 = arith.addf %38, %39 : vector<1x128xf32>
    %41 = math.rsqrt %40 : vector<1x128xf32>
    %42 = arith.mulf %22, %41 : vector<1x128xf32>
    %43 = arith.mulf %29, %42 : vector<1x128xf32>
    %44 = arith.subf %23, %43 : vector<1x128xf32>
    %45 = vector.broadcast %42 : vector<1x128xf32> to vector<16x128xf32>
    %46 = arith.mulf %25, %45 : vector<16x128xf32>
    %47 = vector.broadcast %44 : vector<1x128xf32> to vector<16x128xf32>
    %48 = arith.addf %46, %47 : vector<16x128xf32>
    %cst_20 = arith.constant 0.000000e+00 : f32
    %49 = vector.broadcast %cst_20 : f32 to vector<16x128xf32>
    %50 = arith.maximumf %48, %49 : vector<16x128xf32>
    %c0_21 = arith.constant 0 : index
    %c0_22 = arith.constant 0 : index
    %51 = vector.load %arg6[%c0_21, %c0_22] : memref<128x128xbf16, #tpu.memory_space<vmem>>, vector<128x128xbf16>
    %52 = arith.truncf %50 : vector<16x128xf32> to vector<16x128xbf16>
    %cst_23 = arith.constant dense<0.000000e+00> : vector<16x128xf32>
    %53 = tpu.matmul %52, %51, %cst_23 {dimension_numbers = #tpu.dot_dimension_numbers<[1], [0], [0], [1], [0, 0, 1, 1], [], []>} : vector<16x128xbf16>, vector<128x128xbf16>, vector<16x128xf32> -> vector<16x128xf32>
    %c3 = arith.constant 3 : index
    %c0_24 = arith.constant 0 : index
    %54 = vector.load %arg7[%c3, %c0_24] : memref<6x128xf32, #tpu.memory_space<vmem>>, vector<1x128xf32>
    %55 = vector.broadcast %54 : vector<1x128xf32> to vector<16x128xf32>
    %56 = arith.addf %53, %55 : vector<16x128xf32>
    %c4 = arith.constant 4 : index
    %c0_25 = arith.constant 0 : index
    %57 = vector.load %arg7[%c4, %c0_25] : memref<6x128xf32, #tpu.memory_space<vmem>>, vector<1x128xf32>
    %c5 = arith.constant 5 : index
    %c0_26 = arith.constant 0 : index
    %58 = vector.load %arg7[%c5, %c0_26] : memref<6x128xf32, #tpu.memory_space<vmem>>, vector<1x128xf32>
    %59 = vector.broadcast %8 : vector<16x1xf32> to vector<16x128xf32>
    %60 = arith.mulf %56, %59 : vector<16x128xf32>
    %cst_27 = arith.constant dense<0.000000e+00> : vector<128xf32>
    %61 = vector.multi_reduction <add>, %60, %cst_27 [0] : vector<16x128xf32> to vector<128xf32>
    %62 = vector.shape_cast %61 : vector<128xf32> to vector<1x128xf32>
    %63 = vector.broadcast %3 : f32 to vector<1x128xf32>
    %64 = arith.mulf %62, %63 : vector<1x128xf32>
    %65 = arith.mulf %60, %60 : vector<16x128xf32>
    %cst_28 = arith.constant dense<0.000000e+00> : vector<128xf32>
    %66 = vector.multi_reduction <add>, %65, %cst_28 [0] : vector<16x128xf32> to vector<128xf32>
    %67 = vector.shape_cast %66 : vector<128xf32> to vector<1x128xf32>
    %68 = vector.broadcast %3 : f32 to vector<1x128xf32>
    %69 = arith.mulf %67, %68 : vector<1x128xf32>
    %70 = arith.mulf %64, %64 : vector<1x128xf32>
    %71 = arith.subf %69, %70 : vector<1x128xf32>
    %cst_29 = arith.constant 0.000000e+00 : f32
    %72 = vector.broadcast %cst_29 : f32 to vector<1x128xf32>
    %73 = arith.maximumf %71, %72 : vector<1x128xf32>
    %cst_30 = arith.constant 9.99999974E-6 : f32
    %74 = vector.broadcast %cst_30 : f32 to vector<1x128xf32>
    %75 = arith.addf %73, %74 : vector<1x128xf32>
    %76 = math.rsqrt %75 : vector<1x128xf32>
    %77 = arith.mulf %57, %76 : vector<1x128xf32>
    %78 = arith.mulf %64, %77 : vector<1x128xf32>
    %79 = arith.subf %58, %78 : vector<1x128xf32>
    %80 = vector.broadcast %77 : vector<1x128xf32> to vector<16x128xf32>
    %81 = arith.mulf %60, %80 : vector<16x128xf32>
    %82 = vector.broadcast %79 : vector<1x128xf32> to vector<16x128xf32>
    %83 = arith.addf %81, %82 : vector<16x128xf32>
    %cst_31 = arith.constant 0.000000e+00 : f32
    %84 = vector.broadcast %cst_31 : f32 to vector<16x128xf32>
    %85 = arith.maximumf %83, %84 : vector<16x128xf32>
    %c0_32 = arith.constant 0 : index
    %c0_33 = arith.constant 0 : index
    %86 = vector.load %arg8[%c0_32, %c0_33] : memref<128x128xbf16, #tpu.memory_space<vmem>>, vector<128x128xbf16>
    %87 = arith.truncf %85 : vector<16x128xf32> to vector<16x128xbf16>
    %cst_34 = arith.constant dense<0.000000e+00> : vector<16x128xf32>
    %88 = tpu.matmul %87, %86, %cst_34 {dimension_numbers = #tpu.dot_dimension_numbers<[1], [0], [0], [1], [0, 0, 1, 1], [], []>} : vector<16x128xbf16>, vector<128x128xbf16>, vector<16x128xf32> -> vector<16x128xf32>
    %89 = arith.truncf %88 : vector<16x128xf32> to vector<16x128xbf16>
    %cst_35 = arith.constant dense<0.000000e+00> : vector<16x128xf32>
    %90 = tpu.matmul %10, %89, %cst_35 {dimension_numbers = #tpu.dot_dimension_numbers<[1], [0], [0], [1], [0, 0, 1, 1], [], []>} : vector<16x16xbf16>, vector<16x128xbf16>, vector<16x128xf32> -> vector<16x128xf32>
    %c0_36 = arith.constant 0 : index
    %c0_37 = arith.constant 0 : index
    %91 = vector.load %arg10[%c0_36, %c0_37] : memref<6x128xf32, #tpu.memory_space<vmem>>, vector<1x128xf32>
    %92 = vector.broadcast %91 : vector<1x128xf32> to vector<16x128xf32>
    %93 = arith.addf %90, %92 : vector<16x128xf32>
    %c1_38 = arith.constant 1 : index
    %c0_39 = arith.constant 0 : index
    %94 = vector.load %arg10[%c1_38, %c0_39] : memref<6x128xf32, #tpu.memory_space<vmem>>, vector<1x128xf32>
    %c2_40 = arith.constant 2 : index
    %c0_41 = arith.constant 0 : index
    %95 = vector.load %arg10[%c2_40, %c0_41] : memref<6x128xf32, #tpu.memory_space<vmem>>, vector<1x128xf32>
    %96 = vector.broadcast %8 : vector<16x1xf32> to vector<16x128xf32>
    %97 = arith.mulf %93, %96 : vector<16x128xf32>
    %cst_42 = arith.constant dense<0.000000e+00> : vector<128xf32>
    %98 = vector.multi_reduction <add>, %97, %cst_42 [0] : vector<16x128xf32> to vector<128xf32>
    %99 = vector.shape_cast %98 : vector<128xf32> to vector<1x128xf32>
    %100 = vector.broadcast %3 : f32 to vector<1x128xf32>
    %101 = arith.mulf %99, %100 : vector<1x128xf32>
    %102 = arith.mulf %97, %97 : vector<16x128xf32>
    %cst_43 = arith.constant dense<0.000000e+00> : vector<128xf32>
    %103 = vector.multi_reduction <add>, %102, %cst_43 [0] : vector<16x128xf32> to vector<128xf32>
    %104 = vector.shape_cast %103 : vector<128xf32> to vector<1x128xf32>
    %105 = vector.broadcast %3 : f32 to vector<1x128xf32>
    %106 = arith.mulf %104, %105 : vector<1x128xf32>
    %107 = arith.mulf %101, %101 : vector<1x128xf32>
    %108 = arith.subf %106, %107 : vector<1x128xf32>
    %cst_44 = arith.constant 0.000000e+00 : f32
    %109 = vector.broadcast %cst_44 : f32 to vector<1x128xf32>
    %110 = arith.maximumf %108, %109 : vector<1x128xf32>
    %cst_45 = arith.constant 9.99999974E-6 : f32
    %111 = vector.broadcast %cst_45 : f32 to vector<1x128xf32>
    %112 = arith.addf %110, %111 : vector<1x128xf32>
    %113 = math.rsqrt %112 : vector<1x128xf32>
    %114 = arith.mulf %94, %113 : vector<1x128xf32>
    %115 = arith.mulf %101, %114 : vector<1x128xf32>
    %116 = arith.subf %95, %115 : vector<1x128xf32>
    %117 = vector.broadcast %114 : vector<1x128xf32> to vector<16x128xf32>
    %118 = arith.mulf %97, %117 : vector<16x128xf32>
    %119 = vector.broadcast %116 : vector<1x128xf32> to vector<16x128xf32>
    %120 = arith.addf %118, %119 : vector<16x128xf32>
    %cst_46 = arith.constant 0.000000e+00 : f32
    %121 = vector.broadcast %cst_46 : f32 to vector<16x128xf32>
    %122 = arith.maximumf %120, %121 : vector<16x128xf32>
    %c0_47 = arith.constant 0 : index
    %c0_48 = arith.constant 0 : index
    %123 = vector.load %arg9[%c0_47, %c0_48] : memref<128x128xbf16, #tpu.memory_space<vmem>>, vector<128x128xbf16>
    %124 = arith.truncf %122 : vector<16x128xf32> to vector<16x128xbf16>
    %cst_49 = arith.constant dense<0.000000e+00> : vector<16x128xf32>
    %125 = tpu.matmul %124, %123, %cst_49 {dimension_numbers = #tpu.dot_dimension_numbers<[1], [0], [0], [1], [0, 0, 1, 1], [], []>} : vector<16x128xbf16>, vector<128x128xbf16>, vector<16x128xf32> -> vector<16x128xf32>
    %c3_50 = arith.constant 3 : index
    %c0_51 = arith.constant 0 : index
    %126 = vector.load %arg10[%c3_50, %c0_51] : memref<6x128xf32, #tpu.memory_space<vmem>>, vector<1x128xf32>
    %127 = vector.broadcast %126 : vector<1x128xf32> to vector<16x128xf32>
    %128 = arith.addf %125, %127 : vector<16x128xf32>
    %c4_52 = arith.constant 4 : index
    %c0_53 = arith.constant 0 : index
    %129 = vector.load %arg10[%c4_52, %c0_53] : memref<6x128xf32, #tpu.memory_space<vmem>>, vector<1x128xf32>
    %c5_54 = arith.constant 5 : index
    %c0_55 = arith.constant 0 : index
    %130 = vector.load %arg10[%c5_54, %c0_55] : memref<6x128xf32, #tpu.memory_space<vmem>>, vector<1x128xf32>
    %131 = vector.broadcast %8 : vector<16x1xf32> to vector<16x128xf32>
    %132 = arith.mulf %128, %131 : vector<16x128xf32>
    %cst_56 = arith.constant dense<0.000000e+00> : vector<128xf32>
    %133 = vector.multi_reduction <add>, %132, %cst_56 [0] : vector<16x128xf32> to vector<128xf32>
    %134 = vector.shape_cast %133 : vector<128xf32> to vector<1x128xf32>
    %135 = vector.broadcast %3 : f32 to vector<1x128xf32>
    %136 = arith.mulf %134, %135 : vector<1x128xf32>
    %137 = arith.mulf %132, %132 : vector<16x128xf32>
    %cst_57 = arith.constant dense<0.000000e+00> : vector<128xf32>
    %138 = vector.multi_reduction <add>, %137, %cst_57 [0] : vector<16x128xf32> to vector<128xf32>
    %139 = vector.shape_cast %138 : vector<128xf32> to vector<1x128xf32>
    %140 = vector.broadcast %3 : f32 to vector<1x128xf32>
    %141 = arith.mulf %139, %140 : vector<1x128xf32>
    %142 = arith.mulf %136, %136 : vector<1x128xf32>
    %143 = arith.subf %141, %142 : vector<1x128xf32>
    %cst_58 = arith.constant 0.000000e+00 : f32
    %144 = vector.broadcast %cst_58 : f32 to vector<1x128xf32>
    %145 = arith.maximumf %143, %144 : vector<1x128xf32>
    %cst_59 = arith.constant 9.99999974E-6 : f32
    %146 = vector.broadcast %cst_59 : f32 to vector<1x128xf32>
    %147 = arith.addf %145, %146 : vector<1x128xf32>
    %148 = math.rsqrt %147 : vector<1x128xf32>
    %149 = arith.mulf %129, %148 : vector<1x128xf32>
    %150 = arith.mulf %136, %149 : vector<1x128xf32>
    %151 = arith.subf %130, %150 : vector<1x128xf32>
    %152 = vector.broadcast %149 : vector<1x128xf32> to vector<16x128xf32>
    %153 = arith.mulf %132, %152 : vector<16x128xf32>
    %154 = vector.broadcast %151 : vector<1x128xf32> to vector<16x128xf32>
    %155 = arith.addf %153, %154 : vector<16x128xf32>
    %cst_60 = arith.constant 0.000000e+00 : f32
    %156 = vector.broadcast %cst_60 : f32 to vector<16x128xf32>
    %157 = arith.maximumf %155, %156 : vector<16x128xf32>
    %c0_61 = arith.constant 0 : index
    %c0_62 = arith.constant 0 : index
    %158 = vector.load %arg11[%c0_61, %c0_62] : memref<4x128xbf16, #tpu.memory_space<vmem>>, vector<4x128xbf16>
    %cst_63 = arith.constant dense<0.000000e+00> : vector<16x128xf32>
    %159 = tpu.matmul %14, %158, %cst_63 {dimension_numbers = #tpu.dot_dimension_numbers<[1], [0], [0], [1], [0, 0, 1, 1], [], []>} : vector<16x4xbf16>, vector<4x128xbf16>, vector<16x128xf32> -> vector<16x128xf32>
    %160 = tpu.concatenate %85, %157 in 1 : vector<16x128xf32>, vector<16x128xf32> -> vector<16x256xf32>
    %161 = arith.truncf %160 : vector<16x256xf32> to vector<16x256xbf16>
    %cst_64 = arith.constant dense<0.000000e+00> : vector<2x256xf32>
    %162 = tpu.matmul %12, %161, %cst_64 {dimension_numbers = #tpu.dot_dimension_numbers<[1], [0], [0], [1], [0, 0, 1, 1], [], []>} : vector<2x16xbf16>, vector<16x256xbf16>, vector<2x256xf32> -> vector<2x256xf32>
    %163 = arith.truncf %159 : vector<16x128xf32> to vector<16x128xbf16>
    %cst_65 = arith.constant dense<0.000000e+00> : vector<2x128xf32>
    %164 = tpu.matmul %12, %163, %cst_65 {dimension_numbers = #tpu.dot_dimension_numbers<[1], [0], [0], [1], [0, 0, 1, 1], [], []>} : vector<2x16xbf16>, vector<16x128xbf16>, vector<2x128xf32> -> vector<2x128xf32>
    %165 = vector.extract_strided_slice %162 {offsets = [0, 0], sizes = [2, 128], strides = [1, 1]} : vector<2x256xf32> to vector<2x128xf32>
    %c0_66 = arith.constant 0 : index
    %c0_67 = arith.constant 0 : index
    %166 = vector.load %arg12[%c0_66, %c0_67] : memref<128x128xbf16, #tpu.memory_space<vmem>>, vector<128x128xbf16>
    %167 = arith.truncf %165 : vector<2x128xf32> to vector<2x128xbf16>
    %cst_68 = arith.constant dense<0.000000e+00> : vector<2x128xf32>
    %168 = tpu.matmul %167, %166, %cst_68 {dimension_numbers = #tpu.dot_dimension_numbers<[1], [0], [0], [1], [0, 0, 1, 1], [], []>} : vector<2x128xbf16>, vector<128x128xbf16>, vector<2x128xf32> -> vector<2x128xf32>
    %169 = arith.addf %164, %168 : vector<2x128xf32>
    %170 = vector.extract_strided_slice %162 {offsets = [0, 128], sizes = [2, 128], strides = [1, 1]} : vector<2x256xf32> to vector<2x128xf32>
    %c0_69 = arith.constant 0 : index
    %c0_70 = arith.constant 0 : index
    %171 = vector.load %arg13[%c0_69, %c0_70] : memref<128x128xbf16, #tpu.memory_space<vmem>>, vector<128x128xbf16>
    %172 = arith.truncf %170 : vector<2x128xf32> to vector<2x128xbf16>
    %cst_71 = arith.constant dense<0.000000e+00> : vector<2x128xf32>
    %173 = tpu.matmul %172, %171, %cst_71 {dimension_numbers = #tpu.dot_dimension_numbers<[1], [0], [0], [1], [0, 0, 1, 1], [], []>} : vector<2x128xbf16>, vector<128x128xbf16>, vector<2x128xf32> -> vector<2x128xf32>
    %174 = arith.addf %169, %173 : vector<2x128xf32>
    %c0_72 = arith.constant 0 : index
    %c0_73 = arith.constant 0 : index
    %175 = vector.load %arg14[%c0_72, %c0_73] : memref<1x128xf32, #tpu.memory_space<vmem>>, vector<1x128xf32>
    %176 = vector.broadcast %175 : vector<1x128xf32> to vector<2x128xf32>
    %177 = arith.addf %174, %176 : vector<2x128xf32>
    %178 = vector.extract_strided_slice %162 {offsets = [0, 128], sizes = [2, 128], strides = [1, 1]} : vector<2x256xf32> to vector<2x128xf32>
    %179 = tpu.concatenate %178, %177 in 1 : vector<2x128xf32>, vector<2x128xf32> -> vector<2x256xf32>
    %c0_74 = arith.constant 0 : index
    %c0_75 = arith.constant 0 : index
    %c0_76 = arith.constant 0 : index
    %180 = vector.load %arg15[%c0_74, %c0_75, %c0_76] : memref<1x2x256xf32, #tpu.memory_space<vmem>>, vector<1x2x256xf32>
    %181 = vector.shape_cast %180 : vector<1x2x256xf32> to vector<2x256xf32>
    %182 = vector.shape_cast %179 : vector<2x256xf32> to vector<1x2x256xf32>
    tpu.vector_store %arg15[%c0_74, %c0_75, %c0_76], %182 {strides = array<i32>} : memref<1x2x256xf32, #tpu.memory_space<vmem>>, vector<1x2x256xf32>,
    return
  }
  func.func @transform_0(%arg0: i32, %arg1: memref<2xi32, #tpu.memory_space<smem>>) -> (i32, i32, i32) {
    %c0_i32 = arith.constant 0 : i32
    %c0_i32_0 = arith.constant 0 : i32
    %c0_i32_1 = arith.constant 0 : i32
    return %arg0, %c0_i32, %c0_i32_0 : i32, i32, i32
  }
  func.func @transform_1(%arg0: i32, %arg1: memref<2xi32, #tpu.memory_space<smem>>) -> (i32, i32, i32) {
    %c0_i32 = arith.constant 0 : i32
    %c0_i32_0 = arith.constant 0 : i32
    %c0_i32_1 = arith.constant 0 : i32
    return %arg0, %c0_i32, %c0_i32_0 : i32, i32, i32
  }
  func.func @transform_2(%arg0: i32, %arg1: memref<2xi32, #tpu.memory_space<smem>>) -> (i32, i32, i32) {
    %c0_i32 = arith.constant 0 : i32
    %c0_i32_0 = arith.constant 0 : i32
    %c0_i32_1 = arith.constant 0 : i32
    return %arg0, %c0_i32, %c0_i32_0 : i32, i32, i32
  }
  func.func @transform_3(%arg0: i32, %arg1: memref<2xi32, #tpu.memory_space<smem>>) -> (i32, i32) {
    %c0_i32 = arith.constant 0 : i32
    %c0_i32_0 = arith.constant 0 : i32
    %c0_i32_1 = arith.constant 0 : i32
    return %c0_i32, %c0_i32_0 : i32, i32
  }
  func.func @transform_4(%arg0: i32, %arg1: memref<2xi32, #tpu.memory_space<smem>>) -> (i32, i32) {
    %c0_i32 = arith.constant 0 : i32
    %c0_i32_0 = arith.constant 0 : i32
    %c0_i32_1 = arith.constant 0 : i32
    return %c0_i32, %c0_i32_0 : i32, i32
  }
  func.func @transform_5(%arg0: i32, %arg1: memref<2xi32, #tpu.memory_space<smem>>) -> (i32, i32) {
    %c0_i32 = arith.constant 0 : i32
    %c0_i32_0 = arith.constant 0 : i32
    %c0_i32_1 = arith.constant 0 : i32
    return %c0_i32, %c0_i32_0 : i32, i32
  }
  func.func @transform_6(%arg0: i32, %arg1: memref<2xi32, #tpu.memory_space<smem>>) -> (i32, i32) {
    %c0_i32 = arith.constant 0 : i32
    %c0_i32_0 = arith.constant 0 : i32
    %c0_i32_1 = arith.constant 0 : i32
    return %c0_i32, %c0_i32_0 : i32, i32
  }
  func.func @transform_7(%arg0: i32, %arg1: memref<2xi32, #tpu.memory_space<smem>>) -> (i32, i32) {
    %c0_i32 = arith.constant 0 : i32
    %c0_i32_0 = arith.constant 0 : i32
    %c0_i32_1 = arith.constant 0 : i32
    return %c0_i32, %c0_i32_0 : i32, i32
  }
  func.func @transform_8(%arg0: i32, %arg1: memref<2xi32, #tpu.memory_space<smem>>) -> (i32, i32) {
    %c0_i32 = arith.constant 0 : i32
    %c0_i32_0 = arith.constant 0 : i32
    %c0_i32_1 = arith.constant 0 : i32
    return %c0_i32, %c0_i32_0 : i32, i32
  }
  func.func @transform_9(%arg0: i32, %arg1: memref<2xi32, #tpu.memory_space<smem>>) -> (i32, i32) {
    %c0_i32 = arith.constant 0 : i32
    %c0_i32_0 = arith.constant 0 : i32
    %c0_i32_1 = arith.constant 0 : i32
    return %c0_i32, %c0_i32_0 : i32, i32
  }
  func.func @transform_10(%arg0: i32, %arg1: memref<2xi32, #tpu.memory_space<smem>>) -> (i32, i32) {
    %c0_i32 = arith.constant 0 : i32
    %c0_i32_0 = arith.constant 0 : i32
    %c0_i32_1 = arith.constant 0 : i32
    return %c0_i32, %c0_i32_0 : i32, i32
  }
  func.func @transform_11(%arg0: i32, %arg1: memref<2xi32, #tpu.memory_space<smem>>) -> (i32, i32) {
    %c0_i32 = arith.constant 0 : i32
    %c0_i32_0 = arith.constant 0 : i32
    %c0_i32_1 = arith.constant 0 : i32
    return %c0_i32, %c0_i32_0 : i32, i32
  }
  func.func @transform_12(%arg0: i32, %arg1: memref<2xi32, #tpu.memory_space<smem>>) -> (i32, i32) {
    %c0_i32 = arith.constant 0 : i32
    %c0_i32_0 = arith.constant 0 : i32
    %c0_i32_1 = arith.constant 0 : i32
    return %c0_i32, %c0_i32_0 : i32, i32
  }
  func.func @transform_13(%arg0: i32, %arg1: memref<2xi32, #tpu.memory_space<smem>>) -> (i32, i32, i32) {
    %c0_i32 = arith.constant 0 : i32
    %c0_i32_0 = arith.constant 0 : i32
    %c0_i32_1 = arith.constant 0 : i32
    return %arg0, %c0_i32, %c0_i32_0 : i32, i32, i32
  }
}

</mosaic_0001>

<bundles_post_ra>
// kernel: tpu_custom_call.1
= control target key start
LH: loop header
LB: loop body
LE: loop exit
PB: predicated region body
PF: predicated region fallthrough
CT: control target
= control target key end

     0   :  { %s3645_s0 = inlined_call_operand.hbm [shape: s32[2], index: 0, kind: input, shape index: {}]   ;;  %s3646_s1 = inlined_call_operand.hbm [shape: bf16[2,16,16], index: 1, kind: input, shape index: {}]   ;;  %s3647_s2 = inlined_call_operand.hbm [shape: bf16[2,2,16], index: 2, kind: input, shape index: {}]   ;;  %s3648_s3 = inlined_call_operand.hbm [shape: bf16[2,16,4], index: 3, kind: input, shape index: {}]   ;;  %s3649_s4 = inlined_call_operand.hbm [shape: bf16[4,128], index: 4, kind: input, shape index: {}]   ;;  %s3650_s5 = inlined_call_operand.hbm [shape: bf16[128,128], index: 5, kind: input, shape index: {}]   ;;  %s3651_s6 = inlined_call_operand.hbm [shape: f32[6,128], index: 6, kind: input, shape index: {}]   ;;  %s3652_s7 = inlined_call_operand.hbm [shape: bf16[128,128], index: 7, kind: input, shape index: {}]   ;;  %s3653_s8 = inlined_call_operand.hbm [shape: bf16[128,128], index: 8, kind: input, shape index: {}]   ;;  %s3654_s9 = inlined_call_operand.hbm [shape: f32[6,128], index: 9, kind: input, shape index: {}]   ;;  %s3655_s10 = inlined_call_operand.hbm [shape: bf16[4,128], index: 10, kind: input, shape index: {}]   ;;  %s3656_s11 = inlined_call_operand.hbm [shape: bf16[128,128], index: 11, kind: input, shape index: {}]   ;;  %s3657_s12 = inlined_call_operand.hbm [shape: bf16[128,128], index: 12, kind: input, shape index: {}]   ;;  %s3658_s13 = inlined_call_operand.hbm [shape: f32[1,128], index: 13, kind: input, shape index: {}]   ;;  %s3659_s14 = inlined_call_operand.hbm [shape: f32[2,2,256], index: 14, kind: output, shape index: {}]  }
   0x1   :  { %3686 = sst [smem:[#allocation41_spill]] %s3646_s1  ;;  %s2436_s15 = scalar_lea.hbm %s3645_s0, 16 }
   0x2   :  { %3687 = sst [smem:[#allocation42_spill]] %s3647_s2  ;;  %p2437_p0 = scmp.ne.s32.totalorder %s3645_s0, %s2436_s15 }
   0x3   :  { %3688 = sst [smem:[#allocation43_spill]] %s3648_s3  ;;  %p2440_p1 = scmp.lt.u32.totalorder %s2436_s15, %s3645_s0 }
   0x4   :  { %3689 = sst [smem:[#allocation44_spill]] %s3649_s4 }
   0x5   :  { %3690 = sst [smem:[#allocation45_spill]] %s3650_s5  ;;  %p2442_p2 = pnand %p2440_p1, %p2437_p0 }
   0x6   :  { %3691 = sst [smem:[#allocation46_spill]] %s3651_s6 }
   0x7   :  { %3692 = sst [smem:[#allocation47_spill]] %s3652_s7 }
   0x8   :  { %3693 = sst [smem:[#allocation48_spill]] %s3653_s8 }
   0x9   :  { %3694 = sst [smem:[#allocation49_spill]] %s3654_s9 }
   0xa   :  { %3695 = sst [smem:[#allocation50_spill]] %s3655_s10 }
   0xb   :  { %3696 = sst [smem:[#allocation51_spill]] %s3657_s12 }
   0xc   :  { %3697 = sst [smem:[#allocation52_spill]] %s3658_s13 }
   0xd   :  { %3698 = sst [smem:[#allocation53_spill]] %s3659_s14 }
   0xe   :  { %2445 = shalt.err (!%p2442_p2)  }
   0xf   :  { %s2910_s20 = smov [#allocation3]  }
  0x10   :  { %20 = dma.hbm_to_smem %s3645_s0, 16, %s2910_s20, [#allocation2] }
  0x11   :  { %2860 = dma.done.wait [#allocation2], 16 }
  0x12   :  { %2861 = vsyncadd [#allocation2], 4294967280 }
  0x13   :  { %22 = sfence }
  0x14   :  { %23 = vsyncpa [#allocation5], 0 }
  0x15   :  { %25 = vsyncpa [#allocation5 + $0x1], 0 }
  0x16   :  { %26 = vsyncpa [#allocation8], 0 }
  0x17   :  { %28 = vsyncpa [#allocation8 + $0x1], 0 }
  0x18   :  { %29 = vsyncpa [#allocation11], 0 }
  0x19   :  { %30 = vsyncpa [#allocation14], 0 }
  0x1a   :  { %31 = vsyncpa [#allocation17], 0 }
  0x1b   :  { %32 = vsyncpa [#allocation20], 0 }
  0x1c   :  { %33 = vsyncpa [#allocation23], 0 }
  0x1d   :  { %34 = vsyncpa [#allocation6], 0 }
  0x1e   :  { %36 = vsyncpa [#allocation6 + $0x1], 0  ;;  %s3017_s23 = smov 0   ;;  %s3019_s24 = smov 0  }
  0x1f   :  { %s3021_s25 = smov 0   ;;  %s3023_s0 = smov 0  }
  0x20 LB: > { %3699 = sst [smem:[#allocation35_spill]] %s2896_s23  ;;  %s2911_s26 = smov [#allocation10]   ;;  %s2908_s0 = sphi %s3023_s0, %s3754_s0   ;;  %s2904_s25 = sphi %s3021_s25, %s3756_s25   ;;  %s2900_s24 = sphi %s3019_s24, %s3758_s24   ;;  %s2896_s23 = sphi %s3017_s23, %s3757_s23  }
  0x21   : > { %3700 = sst [smem:[#allocation36_spill]] %s2904_s25  ;;  %s374_s27 = sshll.u32 %s2911_s26, 4  ;;  %s375_s27 = int_to_ptr.vmem [resolvable:$true] %s374_s27 }
  0x22   : > { %s3038_s28 = sadd.s32 4294967295, %s2908_s0   ;;  %p1937_p3 = scmp.ge.s32.totalorder %s2908_s0, 1 }
  0x23   : > { %p3661_p4 = scmp.eq.s32.totalorder %s3038_s28, 0  ;;  %p361_p5 = scmp.lt.s32.totalorder %s2908_s0, 3 }
  0x24   : > { %s2912_s30 = smov [#allocation13]   ;;  %s2913_s17 = smov [#allocation16]  }
  0x25   : > { %p3043_p6 = pnand %p1937_p3, %p361_p5  ;;  %s398_s15 = sshll.u32 %s2912_s30, 4  ;;  %s3050_s15 = int_to_ptr.vmem [resolvable:$true] %s398_s15 }
  0x26   : > { %s421_s18 = sshll.u32 %s2913_s17, 4  ;;  %s3704_s4 = sld [smem:[#allocation44_spill]]  ;;  %s3058_s18 = int_to_ptr.vmem [resolvable:$true] %s421_s18 }
  0x27   : > { %s3701_s29 = scalar_select %p3043_p6, 1, 0 }
  0x28   : > { %p2269_p8 = pneg %p3043_p6 }
  0x29   : > { %3702 = sst [smem:[#allocation37_spill]] %s3701_s29 }
  0x2a   : > { %p3054_p9 = pnand %p2269_p8, %p3661_p4 }
  0x2c   : > { %s3703_s16 = scalar_select %p3054_p9, 1, 0 }
  0x2d   : > { %s2446_s21 = scalar_lea.hbm %s3704_s4, 32  ;;  %p3068_p11 = pneg %p3054_p9 }
  0x2e   : > { %p2447_p10 = scmp.ne.s32.totalorder %s3704_s4, %s2446_s21  ;;  %p2453_p0 = scmp.lt.u32.totalorder %s2446_s21, %s3704_s4 }
  0x2f   : > { %s3705_s30 = scalar_select %p3068_p11, 1, 0 }
  0x30   : > { %p2449_p12 = pnand %p3068_p11, %p2447_p10 }
  0x32   : > { %p2450_p13 = pneg %p2449_p12 }
  0x34   : > { %p2455_p1 = pnand %p2453_p0, %p2450_p13 }
  0x36   : > { %2458 = shalt.err (!%p2455_p1)
}
  0x37   : > { %s2459_s19 = scalar_lea.vmem %s375_s27, 32  ;;  %p2467_p8 = scmp.lt.s32.totalorder %s375_s27, %s375_s27 }
  0x38   : > { %p2460_p2 = scmp.ne.s32.totalorder %s375_s27, %s2459_s19  ;;  %p2468_p7 = scmp.lt.s32.totalorder %s2459_s19, %s2459_s19 }
  0x3a   : > { %p2462_p3 = pnand %p2460_p2, %p3068_p11  ;;  %p2469_p4 = por %p2468_p7, %p2467_p8 }
  0x3c   : > { %p2463_p5 = pneg %p2462_p3 }
  0x3e   : > { %p2470_p6 = pnand %p2469_p4, %p2463_p5 }
  0x40   : > { %2473 = shalt.err (!%p2470_p6)
}
  0x41   : > { %2272 = dma.hbm_to_vmem [thread:$0]  (!%p3054_p9), %s3704_s4, 32, %s375_s27, [#allocation11]  }
  0x42   : > { %s3706_s6 = sld [smem:[#allocation46_spill]] }
  0x48   : > { %s2474_s26 = scalar_lea.hbm %s3706_s6, 128 }
  0x49   : > { %p2475_p10 = scmp.ne.s32.totalorder %s3706_s6, %s2474_s26  ;;  %p2481_p4 = scmp.lt.u32.totalorder %s2474_s26, %s3706_s6 }
  0x4b   : > { %p2477_p12 = pnand %p2475_p10, %p3068_p11 }
  0x4d   : > { %p2478_p7 = pneg %p2477_p12 }
  0x4f   : > { %p2483_p6 = pnand %p2481_p4, %p2478_p7 }
  0x51   : > { %2486 = shalt.err (!%p2483_p6)
}
  0x52   : > { %s2487_s27 = scalar_lea.vmem %s3050_s15, 128  ;;  %p2495_p2 = scmp.lt.s32.totalorder %s3050_s15, %s3050_s15 }
  0x53   : > { %p2488_p13 = scmp.ne.s32.totalorder %s3050_s15, %s2487_s27  ;;  %p2496_p3 = scmp.lt.s32.totalorder %s2487_s27, %s2487_s27 }
  0x55   : > { %p2490_p0 = pnand %p2488_p13, %p3068_p11  ;;  %p2497_p5 = por %p2496_p3, %p2495_p2 }
  0x57   : > { %p2491_p1 = pneg %p2490_p0 }
  0x59   : > { %p2498_p8 = pnand %p2497_p5, %p2491_p1 }
  0x5b   : > { %2501 = shalt.err (!%p2498_p8)
}
  0x5c   : > { %2278 = dma.hbm_to_vmem [thread:$0]  (!%p3054_p9), %s3706_s6, 128, %s3050_s15, [#allocation14]  }
  0x5d   : > { %s3707_s8 = sld [smem:[#allocation48_spill]] }
  0x63   : > { %s2502_s14 = scalar_lea.hbm %s3707_s8, 1024 }
  0x64   : > { %p2503_p10 = scmp.ne.s32.totalorder %s3707_s8, %s2502_s14  ;;  %p2509_p4 = scmp.lt.u32.totalorder %s2502_s14, %s3707_s8 }
  0x66   : > { %p2505_p12 = pnand %p2503_p10, %p3068_p11 }
  0x68   : > { %p2506_p7 = pneg %p2505_p12 }
  0x6a   : > { %p2511_p6 = pnand %p2509_p4, %p2506_p7 }
  0x6c   : > { %2514 = shalt.err (!%p2511_p6)
}
  0x6d   : > { %s2515_s15 = scalar_lea.vmem %s3058_s18, 1024  ;;  %p2523_p2 = scmp.lt.s32.totalorder %s3058_s18, %s3058_s18 }
  0x6e   : > { %p2516_p13 = scmp.ne.s32.totalorder %s3058_s18, %s2515_s15  ;;  %p2524_p3 = scmp.lt.s32.totalorder %s2515_s15, %s2515_s15 }
  0x70   : > { %p2518_p0 = pnand %p2516_p13, %p3068_p11  ;;  %p2525_p5 = por %p2524_p3, %p2523_p2 }
  0x72   : > { %p2519_p1 = pneg %p2518_p0 }
  0x74   : > { %p2526_p8 = pnand %p2525_p5, %p2519_p1 }
  0x76   : > { %2529 = shalt.err (!%p2526_p8)
}
  0x77   : > { %s3667_s27 = smov 64   ;;  %s3669_s3 = smov 4  }
  0x78   : > { %2284 = dma.hbm_to_vmem [thread:$0]  (!%p3054_p9), %s3707_s8, 1024, %s3058_s18, [#allocation17], %s3667_s27, %s3667_s27, %s3669_s3  }
  0x79   : > { %s2916_s22 = smov [#allocation19]   ;;  %s2917_s21 = smov [#allocation22]  }
  0x7a   : > { %s446_s14 = sshll.u32 %s2916_s22, 4  ;;  %s469_s26 = sshll.u32 %s2917_s21, 4  ;;  %s447_s14 = int_to_ptr.vmem [resolvable:$true] %s446_s14  ;;  %s470_s26 = int_to_ptr.vmem [resolvable:$true] %s469_s26 }
  0x7b   : > { %s3708_s10 = sld [smem:[#allocation50_spill]] }
  0x81   : > { %s2530_s15 = scalar_lea.hbm %s3708_s10, 32 }
  0x82   : > { %p2531_p10 = scmp.ne.s32.totalorder %s3708_s10, %s2530_s15  ;;  %p2537_p4 = scmp.lt.u32.totalorder %s2530_s15, %s3708_s10 }
  0x84   : > { %p2533_p12 = pnand %p2531_p10, %p3068_p11 }
  0x86   : > { %p2534_p7 = pneg %p2533_p12 }
  0x88   : > { %p2539_p6 = pnand %p2537_p4, %p2534_p7 }
  0x8a   : > { %2542 = shalt.err (!%p2539_p6)
}
  0x8b   : > { %s2543_s18 = scalar_lea.vmem %s447_s14, 32  ;;  %p2551_p2 = scmp.lt.s32.totalorder %s447_s14, %s447_s14 }
  0x8c   : > { %p2544_p13 = scmp.ne.s32.totalorder %s447_s14, %s2543_s18  ;;  %p2552_p3 = scmp.lt.s32.totalorder %s2543_s18, %s2543_s18 }
  0x8e   : > { %p2546_p0 = pnand %p2544_p13, %p3068_p11  ;;  %p2553_p5 = por %p2552_p3, %p2551_p2 }
  0x90   : > { %p2547_p1 = pneg %p2546_p0 }
  0x92   : > { %p2554_p8 = pnand %p2553_p5, %p2547_p1 }
  0x94   : > { %2557 = shalt.err (!%p2554_p8)
}
  0x95   : > { %2290 = dma.hbm_to_vmem [thread:$0]  (!%p3054_p9), %s3708_s10, 32, %s447_s14, [#allocation20]  }
  0x96   : > { %s3709_s12 = sld [smem:[#allocation51_spill]] }
  0x9c   : > { %s2558_s29 = scalar_lea.hbm %s3709_s12, 1024 }
  0x9d   : > { %p2559_p10 = scmp.ne.s32.totalorder %s3709_s12, %s2558_s29  ;;  %p2565_p4 = scmp.lt.u32.totalorder %s2558_s29, %s3709_s12 }
  0x9f   : > { %p2561_p12 = pnand %p2559_p10, %p3068_p11 }
  0xa1   : > { %p2562_p7 = pneg %p2561_p12 }
  0xa3   : > { %p2567_p6 = pnand %p2565_p4, %p2562_p7 }
  0xa5   : > { %2570 = shalt.err (!%p2567_p6)
}
  0xa6   : > { %s2571_s19 = scalar_lea.vmem %s470_s26, 1024  ;;  %p2579_p2 = scmp.lt.s32.totalorder %s470_s26, %s470_s26 }
  0xa7   : > { %p2572_p13 = scmp.ne.s32.totalorder %s470_s26, %s2571_s19  ;;  %p2580_p3 = scmp.lt.s32.totalorder %s2571_s19, %s2571_s19 }
  0xa9   : > { %p2574_p0 = pnand %p2572_p13, %p3068_p11  ;;  %p2581_p5 = por %p2580_p3, %p2579_p2 }
  0xab   : > { %p2575_p1 = pneg %p2574_p0 }
  0xad   : > { %p2582_p8 = pnand %p2581_p5, %p2575_p1 }
  0xaf   : > { %2585 = shalt.err (!%p2582_p8)
}
  0xb0   : > { %2296 = dma.hbm_to_vmem [thread:$0]  (!%p3054_p9), %s3709_s12, 1024, %s470_s26, [#allocation23], %s3667_s27, %s3667_s27, %s3669_s3  }
  0xb1   : > { %s1936_s18 = sadd.s32 4294967294, %s2908_s0   ;;  %s3174_s4 = sadd.s32 1, %s2908_s0  }
  0xb2   : > { %3710 = sst [smem:[#allocation38_spill]] %s3174_s4  ;;  %s49_s6 = sadd.s32 1, %s2904_s25 }
  0xb3   : > { %s46_s1 = ssub.s32 %s2908_s0, %s3174_s4  ;;  %p56_p10 = scmp.ne.s32.totalorder %s2904_s25, %s2900_s24 }
  0xb4   : > { %p47_p12 = scmp.eq.s32.totalorder %s46_s1, 0  ;;  %p57_p7 = scmp.eq.s32.totalorder %s2908_s0, 0 }
  0xb5   : > { %p62_p4 = scmp.ne.s32.totalorder %s2900_s24, %s2896_s23  ;;  %p348_p6 = scmp.eq.s32.totalorder %s3038_s28, 1 }
  0xb6   : > { %s3186_s13 = scalar_select %p47_p12, %s2904_s25, %s49_s6  }
  0xb7   : > { %p58_p13 = por %p57_p7, %p56_p10  ;;  %p3712_p0 = scmp.eq.s32.totalorder %s3038_s28, 0 }
  0xb8   : > { %3711 = sst [smem:[#allocation39_spill]] %s3186_s13  ;;  %p3194_p2 = por %p348_p6, %p56_p10 }
  0xb9   : > { %p3190_p1 = por %p3712_p0, %p62_p4  ;;  %p354_p3 = scmp.eq.s32.totalorder %s1936_s18, 1 }
  0xba   : > { %s3714_s29 = scalar_select %p3194_p2, 1, 0 }
  0xbb   : > { %s3713_s26 = scalar_select %p3190_p1, 1, 0 }
  0xbc   : > { %p2324_p5 = scmp.lt.s32.totalorder %s2908_s0, 2  ;;  %s3200_s20 = sand.u32 1, %s2904_s25  }
  0xbd   : > { %p3202_p8 = por %p354_p3, %p62_p4  ;;  %s515_s19 = sand.u32 1, %s2908_s0  }
  0xbe   : > { %p3207_p12 = pnand %p2324_p5, %p58_p13  ;;  %s1952_s14 = sshll.u32 %s2908_s0, 4 }
  0xbf   : > { %s3715_s22 = scalar_select %p3202_p8, 1, 0 }
  0xc0   : > { %s3717_s17 = scalar_select %p3207_p12, 1, 0 }
  0xc1   : > { %3716 = sst [smem:[#allocation40_spill]] %s3715_s22  ;;  %s3718_s2 = sld [smem:[#allocation42_spill]] }
  0xc2   : > { %s518_s1 = scalar_lea.vmem [#allocation7], %s3200_s20  ;;  %s3221_s3 = scalar_lea.sflag [#allocation8], %s515_s19 }
  0xc3   : > { %s525_s27 = sshll.u32 %s518_s1, 4  ;;  %p3227_p7 = pneg %p3207_p12  ;;  %s3219_s27 = int_to_ptr.vmem [resolvable:$true] %s525_s27 }
  0xc5   : > { %s3719_s8 = scalar_select %p3227_p7, 1, 0 }
  0xc7   : > { %s3216_s18 = scalar_lea.hbm %s3718_s2, %s1952_s14  ;;  %s2591_s6 = scalar_lea.hbm %s3718_s2, 32 }
  0xc8   : > { %s2586_s21 = scalar_lea.hbm %s3216_s18, 16  ;;  %p2592_p13 = scmp.lt.u32.totalorder %s3216_s18, %s3718_s2 }
  0xc9   : > { %p2587_p10 = scmp.ne.s32.totalorder %s3216_s18, %s2586_s21  ;;  %p2593_p0 = scmp.lt.u32.totalorder %s2591_s6, %s2586_s21 }
  0xca   : > { %p2595_p5 = scmp.lt.u32.totalorder %s2586_s21, %s3216_s18 }
  0xcb   : > { %p2589_p4 = pnand %p3227_p7, %p2587_p10  ;;  %p2594_p3 = por %p2593_p0, %p2592_p13 }
  0xcd   : > { %p2590_p6 = pneg %p2589_p4  ;;  %p2596_p8 = por %p2595_p5, %p2594_p3 }
  0xcf   : > { %p2597_p2 = pnand %p2596_p8, %p2590_p6 }
  0xd1   : > { %2600 = shalt.err (!%p2597_p2)
}
  0xd2   : > { %s2601_s19 = scalar_lea.vmem %s3219_s27, 16  ;;  %s2918_s14 = smov [#allocation7]  }
  0xd3   : > { %p2602_p10 = scmp.ne.s32.totalorder %s3219_s27, %s2601_s19  ;;  %s2606_s15 = sshll.u32 %s2918_s14, 4  ;;  %s2607_s15 = int_to_ptr.vmem [resolvable:$false] %s2606_s15 }
  0xd4   : > { %s2608_s10 = scalar_lea.vmem %s2607_s15, 32  ;;  %p2609_p9 = scmp.lt.s32.totalorder %s3219_s27, %s2607_s15 }
  0xd5   : > { %p2604_p4 = pnand %p2602_p10, %p3227_p7  ;;  %p2610_p11 = scmp.lt.s32.totalorder %s2608_s10, %s2601_s19 }
  0xd7   : > { %p2605_p1 = pneg %p2604_p4  ;;  %p2611_p13 = por %p2610_p11, %p2609_p9 }
  0xd9   : > { %p2612_p0 = pnand %p2611_p13, %p2605_p1 }
  0xdb   : > { %2615 = shalt.err (!%p2612_p0)
}
  0xdc   : > { %2306 = dma.hbm_to_vmem [thread:$0]  (!%p3207_p12), %s3216_s18, 16, %s3219_s27, %s3221_s3  }
  0xdd   : > { %s3720_s21 = sshll.u32 %s3200_s20, 3  ;;  %s2919_s14 = smov [#allocation12]  }
  0xde   : > { %s536_s6 = scalar_lea.vmem [#allocation9], %s3720_s21  ;;  %s384_s2 = sshll.u32 %s2919_s14, 4  ;;  %s385_s2 = int_to_ptr.vmem [resolvable:$true] %s384_s2 }
  0xdf   : > { %s543_s1 = sshll.u32 %s536_s6, 4  ;;  %s3721_s5 = sld [smem:[#allocation45_spill]]  ;;  %s3253_s1 = int_to_ptr.vmem [resolvable:$true] %s543_s1 }
  0xe0   : > { %p3722_p11 = scmp.ne.s32.totalorder %s3705_s30, 0 }
  0xe5   : > { %s2616_s10 = scalar_lea.hbm %s3721_s5, 1024 }
  0xe6   : > { %p2617_p9 = scmp.ne.s32.totalorder %s3721_s5, %s2616_s10  ;;  %p2623_p8 = scmp.lt.u32.totalorder %s2616_s10, %s3721_s5 }
  0xe8   : > { %p2619_p1 = pnand %p2617_p9, %p3722_p11 }
  0xea   : > { %p2620_p2 = pneg %p2619_p1 }
  0xec   : > { %p2625_p6 = pnand %p2623_p8, %p2620_p2 }
  0xee   : > { %2628 = shalt.err (!%p2625_p6)
}
  0xef   : > { %s2629_s21 = scalar_lea.vmem %s385_s2, 1024  ;;  %p2637_p4 = scmp.lt.s32.totalorder %s385_s2, %s385_s2 }
  0xf0   : > { %p2630_p3 = scmp.ne.s32.totalorder %s385_s2, %s2629_s21  ;;  %p2638_p13 = scmp.lt.s32.totalorder %s2629_s21, %s2629_s21 }
  0xf2   : > { %p2632_p5 = pnand %p2630_p3, %p3722_p11  ;;  %p2639_p0 = por %p2638_p13, %p2637_p4 }
  0xf4   : > { %p2633_p10 = pneg %p2632_p5 }
  0xf6   : > { %p2640_p12 = pnand %p2639_p0, %p2633_p10 }
  0xf8   : > { %2643 = shalt.err (!%p2640_p12)
}
  0xf9   : > { %p3723_p9 = scmp.ne.s32.totalorder %s3703_s16, 0  ;;  %s3724_s12 = smov 4  }
  0xfa   : > { %s3725_s13 = smov 64   ;;  %s2920_s19 = smov [#allocation15]  }
  0xfb   : > { %2275 = dma.hbm_to_vmem [thread:$0]  (!%p3723_p9), %s3721_s5, 1024, %s385_s2, [#allocation11], %s3725_s13, %s3725_s13, %s3724_s12  }
  0xfc   : > { %s408_s15 = sshll.u32 %s2920_s19, 4  ;;  %s2921_s10 = smov [#allocation18]   ;;  %s409_s15 = int_to_ptr.vmem [resolvable:$true] %s408_s15 }
  0xfd   : > { %s435_s27 = sshll.u32 %s2921_s10, 4  ;;  %s3726_s7 = sld [smem:[#allocation47_spill]]  ;;  %s436_s27 = int_to_ptr.vmem [resolvable:$true] %s435_s27 }
 0x103   : > { %s2644_s25 = scalar_lea.hbm %s3726_s7, 1024 }
 0x104   : > { %p2645_p12 = scmp.ne.s32.totalorder %s3726_s7, %s2644_s25  ;;  %p2651_p8 = scmp.lt.u32.totalorder %s2644_s25, %s3726_s7 }
 0x106   : > { %p2647_p1 = pnand %p2645_p12, %p3722_p11 }
 0x108   : > { %p2648_p2 = pneg %p2647_p1 }
 0x10a   : > { %p2653_p6 = pnand %p2651_p8, %p2648_p2 }
 0x10c   : > { %2656 = shalt.err (!%p2653_p6)
}
 0x10d   : > { %s2657_s2 = scalar_lea.vmem %s409_s15, 1024  ;;  %p2665_p4 = scmp.lt.s32.totalorder %s409_s15, %s409_s15 }
 0x10e   : > { %p2658_p3 = scmp.ne.s32.totalorder %s409_s15, %s2657_s2  ;;  %p2666_p13 = scmp.lt.s32.totalorder %s2657_s2, %s2657_s2 }
 0x110   : > { %p2660_p5 = pnand %p2658_p3, %p3722_p11  ;;  %p2667_p0 = por %p2666_p13, %p2665_p4 }
 0x112   : > { %p2661_p10 = pneg %p2660_p5 }
 0x114   : > { %p2668_p7 = pnand %p2667_p0, %p2661_p10 }
 0x116   : > { %2671 = shalt.err (!%p2668_p7)
}
 0x117   : > { %2281 = dma.hbm_to_vmem [thread:$0]  (!%p3723_p9), %s3726_s7, 1024, %s409_s15, [#allocation14], %s3725_s13, %s3725_s13, %s3724_s12  }
 0x118   : > { %s3727_s9 = sld [smem:[#allocation49_spill]] }
 0x11e   : > { %s2672_s14 = scalar_lea.hbm %s3727_s9, 128 }
 0x11f   : > { %p2673_p12 = scmp.ne.s32.totalorder %s3727_s9, %s2672_s14  ;;  %p2679_p2 = scmp.lt.u32.totalorder %s2672_s14, %s3727_s9 }
 0x121   : > { %p2675_p7 = pnand %p2673_p12, %p3722_p11 }
 0x123   : > { %p2676_p1 = pneg %p2675_p7 }
 0x125   : > { %p2681_p8 = pnand %p2679_p2, %p2676_p1 }
 0x127   : > { %2684 = shalt.err (!%p2681_p8)
}
 0x128   : > { %s2685_s6 = scalar_lea.vmem %s436_s27, 128  ;;  %p2693_p10 = scmp.lt.s32.totalorder %s436_s27, %s436_s27 }
 0x129   : > { %p2686_p6 = scmp.ne.s32.totalorder %s436_s27, %s2685_s6  ;;  %p2694_p4 = scmp.lt.s32.totalorder %s2685_s6, %s2685_s6 }
 0x12b   : > { %p2688_p3 = pnand %p2686_p6, %p3722_p11  ;;  %p2695_p13 = por %p2694_p4, %p2693_p10 }
 0x12d   : > { %p2689_p5 = pneg %p2688_p3 }
 0x12f   : > { %p2696_p0 = pnand %p2695_p13, %p2689_p5 }
 0x131   : > { %2699 = shalt.err (!%p2696_p0)
}
 0x132   : > { %2287 = dma.hbm_to_vmem [thread:$0]  (!%p3723_p9), %s3727_s9, 128, %s436_s27, [#allocation17]  }
 0x133   : > { %s2922_s23 = smov [#allocation21]   ;;  %s2923_s4 = smov [#allocation24]  }
 0x134   : > { %s456_s25 = sshll.u32 %s2922_s23, 4  ;;  %s483_s22 = sshll.u32 %s2923_s4, 4  ;;  %s457_s25 = int_to_ptr.vmem [resolvable:$true] %s456_s25  ;;  %s484_s22 = int_to_ptr.vmem [resolvable:$true] %s483_s22 }
 0x135   : > { %s2700_s10 = scalar_lea.hbm %s3656_s11, 1024 }
 0x136   : > { %p2701_p12 = scmp.ne.s32.totalorder %s3656_s11, %s2700_s10  ;;  %p2707_p2 = scmp.lt.u32.totalorder %s2700_s10, %s3656_s11 }
 0x138   : > { %p2703_p7 = pnand %p2701_p12, %p3722_p11 }
 0x13a   : > { %p2704_p1 = pneg %p2703_p7 }
 0x13c   : > { %p2709_p8 = pnand %p2707_p2, %p2704_p1 }
 0x13e   : > { %2712 = shalt.err (!%p2709_p8)
}
 0x13f   : > { %s2713_s27 = scalar_lea.vmem %s457_s25, 1024  ;;  %p2721_p10 = scmp.lt.s32.totalorder %s457_s25, %s457_s25 }
 0x140   : > { %p2714_p6 = scmp.ne.s32.totalorder %s457_s25, %s2713_s27  ;;  %p2722_p4 = scmp.lt.s32.totalorder %s2713_s27, %s2713_s27 }
 0x142   : > { %p2716_p3 = pnand %p2714_p6, %p3722_p11  ;;  %p2723_p13 = por %p2722_p4, %p2721_p10 }
 0x144   : > { %p2717_p5 = pneg %p2716_p3 }
 0x146   : > { %p2724_p0 = pnand %p2723_p13, %p2717_p5 }
 0x148   : > { %2727 = shalt.err (!%p2724_p0)
}
 0x149   : > { %2293 = dma.hbm_to_vmem [thread:$0]  (!%p3723_p9), %s3656_s11, 1024, %s457_s25, [#allocation20], %s3725_s13, %s3725_s13, %s3724_s12  }
 0x14a   : > { %s3728_s19 = sld [smem:[#allocation52_spill]] }
 0x150   : > { %s2728_s10 = scalar_lea.hbm %s3728_s19, 16 }
 0x151   : > { %p2729_p12 = scmp.ne.s32.totalorder %s3728_s19, %s2728_s10  ;;  %p2735_p2 = scmp.lt.u32.totalorder %s2728_s10, %s3728_s19 }
 0x153   : > { %p2731_p7 = pnand %p2729_p12, %p3722_p11 }
 0x155   : > { %p2732_p1 = pneg %p2731_p7 }
 0x157   : > { %p2737_p8 = pnand %p2735_p2, %p2732_p1 }
 0x159   : > { %2740 = shalt.err (!%p2737_p8)
}
 0x15a   : > { %s2741_s27 = scalar_lea.vmem %s484_s22, 16  ;;  %s2748_s25 = scalar_lea.vmem %s484_s22, 32 }
 0x15b   : > { %p2742_p6 = scmp.ne.s32.totalorder %s484_s22, %s2741_s27  ;;  %p2749_p10 = scmp.lt.s32.totalorder %s484_s22, %s484_s22 }
 0x15c   : > { %p2750_p4 = scmp.lt.s32.totalorder %s2748_s25, %s2741_s27 }
 0x15d   : > { %p2744_p3 = pnand %p2742_p6, %p3722_p11 }
 0x15e   : > { %p2751_p13 = por %p2750_p4, %p2749_p10 }
 0x15f   : > { %p2745_p5 = pneg %p2744_p3 }
 0x161   : > { %p2752_p0 = pnand %p2751_p13, %p2745_p5 }
 0x163   : > { %2755 = shalt.err (!%p2752_p0)
}
 0x164   : > { %2299 = dma.hbm_to_vmem [thread:$0]  (!%p3723_p9), %s3728_s19, 16, %s484_s22, [#allocation23]  }
 0x165   : > { %s2031_s4 = sshll.u32 %s2908_s0, 7  ;;  %s3729_s10 = sld [smem:[#allocation41_spill]] }
 0x166   : > { %s3730_s21 = sshll.u32 %s3200_s20, 3  ;;  %s3731_s25 = sld [smem:[#allocation43_spill]] }
 0x167   : > { %s498_s16 = scalar_lea.vmem [#allocation4], %s3730_s21  ;;  %s495_s22 = scalar_lea.sflag [#allocation5], %s3200_s20 }
 0x168   : > { %s505_s6 = sshll.u32 %s498_s16, 4  ;;  %p3733_p9 = scmp.ne.s32.totalorder %s3719_s8, 0  ;;  %s3362_s6 = int_to_ptr.vmem [resolvable:$true] %s505_s6 }
 0x16b   : > { %s3358_s18 = scalar_lea.hbm %s3729_s10, %s2031_s4  ;;  %s2761_s7 = scalar_lea.hbm %s3729_s10, 256 }
 0x16c   : > { %s3732_s2 = smov %s3731_s25  ;;  %s3367_s23 = scalar_lea.hbm %s3731_s25, %s2031_s4 }
 0x16d   : > { %s2756_s5 = scalar_lea.hbm %s3358_s18, 128  ;;  %p2762_p1 = scmp.lt.u32.totalorder %s3358_s18, %s3729_s10 }
 0x16e   : > { %p2757_p11 = scmp.ne.s32.totalorder %s3358_s18, %s2756_s5  ;;  %p2763_p2 = scmp.lt.u32.totalorder %s2761_s7, %s2756_s5 }
 0x16f   : > { %p2765_p6 = scmp.lt.u32.totalorder %s2756_s5, %s3358_s18 }
 0x170   : > { %p2759_p12 = pnand %p2757_p11, %p3733_p9  ;;  %p2764_p8 = por %p2763_p2, %p2762_p1 }
 0x172   : > { %p2760_p7 = pneg %p2759_p12  ;;  %p2766_p3 = por %p2765_p6, %p2764_p8 }
 0x174   : > { %p2767_p5 = pnand %p2766_p3, %p2760_p7 }
 0x176   : > { %2770 = shalt.err (!%p2767_p5)
}
 0x177   : > { %s2771_s4 = scalar_lea.vmem %s3362_s6, 128  ;;  %s2924_s16 = smov [#allocation4]  }
 0x178   : > { %p2772_p10 = scmp.ne.s32.totalorder %s3362_s6, %s2771_s4  ;;  %s2776_s15 = sshll.u32 %s2924_s16, 4  ;;  %s2777_s15 = int_to_ptr.vmem [resolvable:$false] %s2776_s15 }
 0x179   : > { %s2778_s9 = scalar_lea.vmem %s2777_s15, 256  ;;  %p2779_p0 = scmp.lt.s32.totalorder %s3362_s6, %s2777_s15 }
 0x17a   : > { %p2774_p4 = pnand %p2772_p10, %p3733_p9  ;;  %p2780_p11 = scmp.lt.s32.totalorder %s2778_s9, %s2771_s4 }
 0x17c   : > { %p2775_p13 = pneg %p2774_p4  ;;  %p2781_p12 = por %p2780_p11, %p2779_p0 }
 0x17e   : > { %p2782_p1 = pnand %p2781_p12, %p2775_p13 }
 0x180   : > { %2785 = shalt.err (!%p2782_p1)
}
 0x181   : > { %p3734_p7 = scmp.ne.s32.totalorder %s3717_s17, 0  ;;  %s2786_s5 = scalar_lea.hbm %s3367_s23, 128 }
 0x182   : > { %p2787_p2 = scmp.ne.s32.totalorder %s3367_s23, %s2786_s5  ;;  %s2791_s25 = scalar_lea.hbm %s3732_s2, 256 }
 0x183   : > { %2303 = dma.hbm_to_vmem [thread:$0]  (!%p3734_p7), %s3358_s18, 128, %s3362_s6, %s495_s22, %s3725_s13, %s3725_s13, %s3724_s12  }
 0x184   : > { %p2789_p8 = pnand %p2787_p2, %p3733_p9  ;;  %p2792_p3 = scmp.lt.u32.totalorder %s3367_s23, %s3732_s2 }
 0x185   : > { %p2793_p5 = scmp.lt.u32.totalorder %s2791_s25, %s2786_s5  ;;  %p2795_p4 = scmp.lt.u32.totalorder %s2786_s5, %s3367_s23 }
 0x186   : > { %p2790_p6 = pneg %p2789_p8 }
 0x187   : > { %p2794_p10 = por %p2793_p5, %p2792_p3 }
 0x189   : > { %p2796_p13 = por %p2795_p4, %p2794_p10 }
 0x18b   : > { %p2797_p0 = pnand %p2796_p13, %p2790_p6 }
 0x18d   : > { %2800 = shalt.err (!%p2797_p0)
}
 0x18e   : > { %s2801_s20 = scalar_lea.vmem %s3253_s1, 128  ;;  %s2925_s18 = smov [#allocation9]  }
 0x18f   : > { %p2802_p11 = scmp.ne.s32.totalorder %s3253_s1, %s2801_s20  ;;  %s2806_s6 = sshll.u32 %s2925_s18, 4  ;;  %s2807_s6 = int_to_ptr.vmem [resolvable:$false] %s2806_s6 }
 0x190   : > { %s2808_s22 = scalar_lea.vmem %s2807_s6, 256  ;;  %p2809_p2 = scmp.lt.s32.totalorder %s3253_s1, %s2807_s6 }
 0x191   : > { %p2804_p12 = pnand %p2802_p11, %p3733_p9  ;;  %p2810_p8 = scmp.lt.s32.totalorder %s2808_s22, %s2801_s20 }
 0x193   : > { %p2805_p1 = pneg %p2804_p12  ;;  %p2811_p3 = por %p2810_p8, %p2809_p2 }
 0x195   : > { %p2812_p5 = pnand %p2811_p3, %p2805_p1 }
 0x197   : > { %2815 = shalt.err (!%p2812_p5)
}
 0x198   : > { %2309 = dma.hbm_to_vmem [thread:$0]  (!%p3734_p7), %s3367_s23, 128, %s3253_s1, %s3221_s3, %s3725_s13, %s3725_s13, %s3724_s12  }
 0x199   : > { %s3735_s8 = sld [smem:[#allocation37_spill]] }
 0x19f   : > { %p3736_p9 = scmp.ne.s32.totalorder %s3735_s8, 0 }
 0x1a0   : > { %s3424_s21 = sand.u32 (!%p3736_p9), 1, %s2900_s24   ;;  %p3737_p6 = scmp.ne.s32.totalorder (!%p3736_p9), %s3713_s26, 0 }
 0x1a1   : > { %555 = sbr.rel (%p3736_p9) target bundleno = 2415 (0x96f), region = 72  ;;  %s1957_s4 = sshll.u32 (!%p3736_p9), %s3424_s21, 3 }
 0x1a2   : > { %s558_s16 = scalar_lea.sflag (!%p3736_p9), [#allocation5], %s3424_s21  ;;  %s3428_s15 = scalar_lea.vmem (!%p3736_p9), [#allocation4], %s1957_s4 }
 0x1a8   : > { %2863 = dma.done.wait (%p3737_p6), %s558_s16, 128  }
 0x1a9   : > { %2865 = vsyncadd (%p3737_p6), %s558_s16, 4294967168  ;;  %s566_s3 = sand.u32 1, %s3038_s28   ;;  %s569_s1 = scalar_lea.vmem [#allocation7], %s3424_s21 }
 0x1aa   : > { %s567_s17 = scalar_lea.sflag [#allocation8], %s566_s3 }
 0x1ab   : > { %2867 = dma.done.wait (%p3737_p6), %s567_s17, 144  }
 0x1ac   : > { %2869 = vsyncadd (%p3737_p6), %s567_s17, 4294967152  ;;  %s578_s12 = scalar_lea.vmem [#allocation9], %s1957_s4  ;;  %p3738_p7 = scmp.eq.s32.totalorder %s3038_s28, 0 }
 0x1ae   : > { %2871 = dma.done.wait (%p3738_p7), [#allocation11], 1056   ;;  %p3739_p10 = pmov %p3738_p7 }
 0x1af   : > { %p3740_p4 = pmov %p3738_p7 }
 0x1b0   : > { %2873 = vsyncadd (%p3739_p10), [#allocation11], 4294966240 }
 0x1b1   : > { %2875 = dma.done.wait (%p3740_p4), [#allocation14], 1152   ;;  %p3741_p13 = pmov %p3740_p4 }
 0x1b2   : > { %p3742_p0 = pmov %p3740_p4 }
 0x1b3   : > { %2877 = vsyncadd (%p3741_p13), [#allocation14], 4294966144 }
 0x1b4   : > { %2879 = dma.done.wait (%p3742_p0), [#allocation17], 1152   ;;  %p3743_p11 = pmov %p3742_p0 }
 0x1b5   : > { %p3744_p12 = pmov %p3742_p0 }
 0x1b6   : > { %2881 = vsyncadd (%p3743_p11), [#allocation17], 4294966144 }
 0x1b7   : > { %2883 = dma.done.wait (%p3744_p12), [#allocation20], 1056   ;;  %p3745_p1 = pmov %p3742_p0 }
 0x1b8   : > { %p3746_p2 = pmov %p3742_p0 }
 0x1b9   : > { %2885 = vsyncadd (%p3745_p1), [#allocation20], 4294966240 }
 0x1ba   : > { %2887 = dma.done.wait (%p3746_p2), [#allocation23], 1040   ;;  %p3747_p8 = pmov %p3742_p0 }
 0x1bb   : > { %v2926_v0 = vmov 0.0   ;;  %vm2927_vm0 = vmmov 0   ;;  %vm701_vm1 = vcmask 1041408   ;;  %v691_v1 = vld [vmem:[#allocation10] sm:$0x3]  ;;  %v3467_v3 = vld [vmem:[%s578_s12] sm:$0xff]   ;;  %v676_v20 = vlaneseq }
 0x1bc   : > { %2889 = vsyncadd (%p3747_p8), [#allocation23], 4294966256  ;;  %2089 = vmatprep.subr.bf16.mxu0 %v2926_v0  ;;  %2091 = vmatprep.mubr.msk.bf16.mxu0 %vm2927_vm0, %v2926_v0  ;;  %v703_v2 = vsel %vm701_vm1, %v691_v1, 0  ;;  %vm697_vm2 = vcmask 31744   ;;  %s3475_s26 = sld [smem:[#allocation3 + %s3038_s28]]  ;;  %v3479_v11 = vld [vmem:[%s3428_s15] sm:$0xff]  }
 0x1bd   : > { %2095 = vmatprep.subr.bf16.mxu1 %v2926_v0  ;;  %2097 = vmatprep.mubr.msk.bf16.mxu1 %vm2927_vm0, %v2926_v0  ;;  %vm757_vm3 = vcmask 130048   ;;  %v2386_v12 = vld [vmem:[#allocation12] sm:$0xff]   ;;  %v2387_v13 = vld [vmem:[#allocation12 + $0x8] sm:$0xff]   ;;  %v2388_v14 = vld [vmem:[#allocation12 + $0x10] sm:$0xff]   ;;  %v677_v21 = vshrl.u32 %v676_v20, 7  ;;  %s1969_s9 = sshll.u32 %s3424_s21, 2 }
 0x1be   : > { %2090 = vmatpush3.bf16.msra.mxu0 %v703_v2  ;;  %v2389_v15 = vld [vmem:[#allocation12 + $0x18] sm:$0xff]   ;;  %v2390_v16 = vld [vmem:[#allocation12 + $0x20] sm:$0xff]   ;;  %v2391_v17 = vld [vmem:[#allocation12 + $0x28] sm:$0xff]   ;;  %s2033_s5 = sshll.u32 %s3038_s28, 6  ;;  %s669_s7 = scalar_lea.vmem [#allocation25], %s1969_s9 }
 0x1bf   : > { %2101 = vmatprep.subr.bf16.mxu0 %v2926_v0  ;;  %v2392_v18 = vld [vmem:[#allocation12 + $0x30] sm:$0xff]   ;;  %v2393_v19 = vld [vmem:[#allocation12 + $0x38] sm:$0xff]   ;;  %v678_v23 = vadd.s32 8, %v677_v21  ;;  %v1974_v24 = vld [vmem:[#allocation13] ss:$0 sm:$0xff]  ;;  %v3507_v59 = vsub.s32 0, %v677_v21 }
 0x1c0   : > { %v802_v58 = vld [vmem:[#allocation13 + $0x1] sm:$0x1]  ;;  %v803_v62 = vld [vmem:[#allocation13 + $0x2] sm:$0x1]  ;;  %s1731_s27 = sshll.u32 %s669_s7, 4  ;;  %s3748_s14 = sld [smem:[#allocation53_spill]]  ;;  %s3603_s27 = int_to_ptr.vmem [resolvable:$true] %s1731_s27 }
 0x1c1   : > { %2092 = vmatmul.mubr.msk.bf16.vlgmr.msra.gmra.mrb[0].mxu0 %vm697_vm2, %v3467_v3  ;;  %v2401_v20 = vld [vmem:[#allocation15 + $0x38] sm:$0xff]   ;;  %s1717_s18 = scalar_lea.sflag [#allocation6], %s3424_s21  ;;  %s2816_s6 = scalar_lea.vmem %s3603_s27, 64 }
 0x1c2   : > { %2117 = vmatprep.mubr.msk.bf16.mxu0 %vm2927_vm0, %v2926_v0  ;;  %s672_s13 = scvt.s32.f32 %s3475_s26  ;;  %2102 = vmatpush3.bf16.msra.mxu0 %v2386_v12  ;;  %v679_v22 = vstv %s3475_s26  ;;  %p2817_p3 = scmp.ne.s32.totalorder %s3603_s27, %s2816_s6 }
 0x1c3   : > { %2103 = vmatprep.subr.bf16.mxu0 %v2926_v0  ;;  %vm680_vm4 = vcmp.lt.s32.totalorder %v677_v21, %v679_v22  ;;  %vm681_vm5 = vcmp.lt.s32.totalorder %v678_v23, %v679_v22  ;;  %v1977_v21 = vld [vmem:[#allocation13 + $0x3] ss:$0 sm:$0xff]  ;;  %p3749_p5 = scmp.ne.s32.totalorder %s3714_s29, 0  ;;  %s2929_s28 = smov [#allocation25]  }
 0x1c4   : > { %v673_v4 = vstv %s672_s13  ;;  %v3496_v25 = vsel %vm680_vm4, 1.0, %v2926_v0  ;;  %v3499_v29 = vsel %vm681_vm5, 1.0, %v2926_v0  ;;  %s2820_s22 = sshll.u32 %s2929_s28, 4  ;;  %s2821_s22 = int_to_ptr.vmem [resolvable:$false] %s2820_s22 }
 0x1c5   : > { %2426 = vrcp.f32 %v673_v4  ;;  %p2818_p9 = pnand %p2817_p3, %p3749_p5  ;;  %s2822_s8 = scalar_lea.vmem %s2821_s22, 128 }
 0x1c6   : > { %2104 = vmatpush3.bf16.msra.mxu0 %v2387_v13  ;;  %v2394_v13 = vld [vmem:[#allocation15] sm:$0xff]   ;;  %s3601_s20 = scalar_lea.hbm %s3748_s14, %s2033_s5  ;;  %p2823_p7 = scmp.lt.s32.totalorder %s3603_s27, %s2821_s22 }
 0x1c7   : > { %2105 = vmatprep.subr.bf16.mxu0 %v2926_v0  ;;  %p2819_p6 = pneg %p2818_p9  ;;  %p2824_p10 = scmp.lt.s32.totalorder %s2822_s8, %s2816_s6 }
 0x1c9   : > { %p2825_p4 = por %p2824_p10, %p2823_p7 }
 0x1ca   : > { %2106 = vmatpush3.bf16.msra.mxu0 %v2388_v14  ;;  %v2395_v14 = vld [vmem:[#allocation15 + $0x8] sm:$0xff]  }
 0x1cb   : > { %2107 = vmatprep.subr.bf16.mxu0 %v2926_v0  ;;  %p2826_p13 = pnand %p2825_p4, %p2819_p6 }
 0x1ce   : > { %2108 = vmatpush3.bf16.msra.mxu0 %v2389_v15  ;;  %v2396_v15 = vld [vmem:[#allocation15 + $0x10] sm:$0xff]  }
 0x1cf   : > { %v2427_v5 = vpop.eup %2426  ;;  %2109 = vmatprep.subr.bf16.mxu0 %v2926_v0 }
 0x1d0   : > { %2219 = vpush %v2427_v5 }
 0x1d2   : > { %2110 = vmatpush3.bf16.msra.mxu0 %v2390_v16  ;;  %v2397_v16 = vld [vmem:[#allocation15 + $0x18] sm:$0xff]  }
 0x1d3   : > { %2111 = vmatprep.subr.bf16.mxu0 %v2926_v0 }
 0x1d6   : > { %2112 = vmatpush3.bf16.msra.mxu0 %v2391_v17  ;;  %v2398_v17 = vld [vmem:[#allocation15 + $0x20] sm:$0xff]  }
 0x1d7   : > { %2113 = vmatprep.subr.bf16.mxu0 %v2926_v0 }
 0x1da   : > { %2114 = vmatpush3.bf16.msra.mxu0 %v2392_v18  ;;  %v2399_v18 = vld [vmem:[#allocation15 + $0x28] sm:$0xff]  }
 0x1db   : > { %2115 = vmatprep.subr.bf16.mxu0 %v2926_v0 }
 0x1de   : > { %2116 = vmatpush3.bf16.msra.mxu0 %v2393_v19  ;;  %v2400_v19 = vld [vmem:[#allocation15 + $0x30] sm:$0xff]  }
 0x1df   : > { %2141 = vmatprep.subr.bf16.mxu0 %v2926_v0 }
 0x201   : > { %s2220_s23 = spop %2219 }
 0x202   : > { %v3503_v48 = vstv %s2220_s23 }
 0x294   : > { %v739_v6 = vpop.f32.mrb[0].mxu0 }
 0x295   : > { %v2093_v7 = vpop.f32.mrb[1].mxu0 }
 0x296   : > { %v742_v8 = vpop.f32.mrb[2].mxu0 }
 0x297   : > { %v746_v9 = vpack.c.bf16 %v742_v8, %v739_v6  ;;  %v2094_v10 = vpop.f32.mrb[3].mxu0 }
 0x299   : > { %2096 = vmatpush3.bf16.msra.mxu1 %v746_v9 }
 0x29a   : > { %2121 = vmatprep.subr.bf16.mxu1 %v2926_v0 }
 0x29c   : > { %2098 = vmatmul.mubr.msk.bf16.vlgmr.msra.gmra.mrb[0].mxu1 %vm757_vm3, %v3479_v11 }
 0x29d   : > { %2137 = vmatprep.mubr.msk.bf16.mxu1 %vm2927_vm0, %v2926_v0  ;;  %2122 = vmatpush3.bf16.msra.mxu1 %v2394_v13  ;;  %v1354_v13 = vld [vmem:[#allocation19] sm:$0x3] }
 0x29e   : > { %2123 = vmatprep.subr.bf16.mxu1 %v2926_v0 }
 0x2a1   : > { %2124 = vmatpush3.bf16.msra.mxu1 %v2395_v14 }
 0x2a2   : > { %2125 = vmatprep.subr.bf16.mxu1 %v2926_v0 }
 0x2a5   : > { %2126 = vmatpush3.bf16.msra.mxu1 %v2396_v15 }
 0x2a6   : > { %2127 = vmatprep.subr.bf16.mxu1 %v2926_v0 }
 0x2a9   : > { %2128 = vmatpush3.bf16.msra.mxu1 %v2397_v16  ;;  %v1356_v16 = vsel %vm701_vm1, %v1354_v13, 0  ;;  %v2928_v13 = vmov 0  }
 0x2aa   : > { %2129 = vmatprep.subr.bf16.mxu1 %v2926_v0 }
 0x2ad   : > { %2130 = vmatpush3.bf16.msra.mxu1 %v2398_v17  ;;  %v2402_v17 = vld [vmem:[#allocation16] sm:$0xff]  }
 0x2ae   : > { %2131 = vmatprep.subr.bf16.mxu1 %v2926_v0 }
 0x2b1   : > { %2132 = vmatpush3.bf16.msra.mxu1 %v2399_v18  ;;  %v2403_v18 = vld [vmem:[#allocation16 + $0x8] sm:$0xff]  }
 0x2b2   : > { %2133 = vmatprep.subr.bf16.mxu1 %v2926_v0 }
 0x2b5   : > { %2134 = vmatpush3.bf16.msra.mxu1 %v2400_v19  ;;  %v2404_v19 = vld [vmem:[#allocation16 + $0x10] sm:$0xff]  }
 0x2b6   : > { %2135 = vmatprep.subr.bf16.mxu1 %v2926_v0 }
 0x2b9   : > { %2136 = vmatpush3.bf16.msra.mxu1 %v2401_v20  ;;  %v2406_v20 = vld [vmem:[#allocation16 + $0x20] sm:$0xff]  }
 0x2ba   : > { %2147 = vmatprep.subr.bf16.mxu1 %v2926_v0 }
 0x36f   : > { %v795_v26 = vpop.f32.mrb[0].mxu1 }
 0x370   : > { %v796_v27 = vadd.f32 %v1974_v24, %v795_v26  ;;  %v2099_v28 = vpop.f32.mrb[1].mxu1 }
 0x371   : > { %v798_v30 = vpop.f32.mrb[2].mxu1 }
 0x372   : > { %v804_v31 = vmul.f32 %v3496_v25, %v796_v27  ;;  %v799_v32 = vadd.f32 %v1974_v24, %v798_v30  ;;  %v2100_v33 = vpop.f32.mrb[3].mxu1 }
 0x374   : > { %v805_v34 = vmul.f32 %v3499_v29, %v799_v32  ;;  %v815_v35 = vmul.f32 %v804_v31, %v804_v31 }
 0x376   : > { %v806_v36 = vadd.f32 %v805_v34, %v804_v31  ;;  %v816_v37 = vmul.f32 %v805_v34, %v805_v34 }
 0x378   : > { %v807_v38 = vrot.slane %v806_v36, 4  ;;  %v817_v39 = vadd.f32 %v816_v37, %v815_v35 }
 0x37a   : > { %v808_v40 = vadd.f32 %v807_v38, %v806_v36  ;;  %v818_v41 = vrot.slane %v817_v39, 4 }
 0x37c   : > { %v809_v42 = vrot.slane %v808_v40, 2  ;;  %v819_v43 = vadd.f32 %v818_v41, %v817_v39 }
 0x37e   : > { %v810_v44 = vadd.f32 %v809_v42, %v808_v40  ;;  %v820_v45 = vrot.slane %v819_v43, 2 }
 0x380   : > { %v811_v46 = vrot.slane %v810_v44, 1  ;;  %v821_v47 = vadd.f32 %v820_v45, %v819_v43 }
 0x382   : > { %v812_v49 = vadd.f32 %v811_v46, %v810_v44  ;;  %v822_v50 = vrot.slane %v821_v47, 1 }
 0x384   : > { %v823_v51 = vadd.f32 %v822_v50, %v821_v47  ;;  %v814_v52 = vmul.f32 %v3503_v48, %v812_v49 }
 0x386   : > { %v824_v53 = vmul.f32 %v823_v51, %v3503_v48  ;;  %v825_v54 = vmul.f32 %v814_v52, %v814_v52 }
 0x388   : > { %v826_v55 = vsub.f32 %v824_v53, %v825_v54 }
 0x38a   : > { %v827_v56 = vmax.f32 %v826_v55, 0.0  ;;  %v958_v55 = vld [vmem:[#allocation13 + $0x4] sm:$0x1] }
 0x38c   : > { %v828_v57 = vadd.f32 1e-05, %v827_v56 }
 0x38e   : > { %2428 = vrsqrt.f32 %v828_v57 }
 0x398   : > { %v2429_v60 = vpop.eup %2428 }
 0x399   : > { %v830_v61 = vmul.f32 %v2429_v60, %v802_v58  ;;  %v959_v58 = vld [vmem:[#allocation13 + $0x5] sm:$0x1] }
 0x39b   : > { %v831_v63 = vmul.f32 %v830_v61, %v814_v52  ;;  %v836_v1 = vrot.slane %v830_v61, %v3507_v59 }
 0x39d   : > { %v832_v2 = vsub.f32 %v803_v62, %v831_v63  ;;  %v837_v4 = vmul.f32 %v836_v1, %v804_v31  ;;  %v838_v5 = vmul.f32 %v836_v1, %v805_v34 }
 0x39f   : > { %v842_v6 = vrot.slane %v832_v2, %v3507_v59 }
 0x3a1   : > { %v843_v7 = vadd.f32 %v842_v6, %v837_v4  ;;  %v844_v8 = vadd.f32 %v842_v6, %v838_v5 }
 0x3a3   : > { %v845_v9 = vmax.f32 %v843_v7, 0.0  ;;  %v846_v10 = vmax.f32 %v844_v8, 0.0 }
 0x3a5   : > { %v863_v12 = vpack.c.bf16 %v846_v10, %v845_v9 }
 0x3a7   : > { %2118 = vmatmul.mubr.bf16.vlgmr.msra.gmra.mrb[4].mxu0 %v863_v12 }
 0x3a8   : > { %2143 = vmatprep.mubr.msk.bf16.mxu0 %vm2927_vm0, %v2926_v0 }
 0x47a   : > { %v951_v22 = vpop.f32.mrb[4].mxu0 }
 0x47b   : > { %v952_v23 = vadd.f32 %v1977_v21, %v951_v22  ;;  %v2119_v24 = vpop.f32.mrb[5].mxu0  ;;  %v2409_v22 = vld [vmem:[#allocation16 + $0x38] sm:$0xff]  }
 0x47c   : > { %v954_v26 = vpop.f32.mrb[6].mxu0 }
 0x47d   : > { %v960_v27 = vmul.f32 %v3496_v25, %v952_v23  ;;  %v955_v28 = vadd.f32 %v1977_v21, %v954_v26  ;;  %v2120_v30 = vpop.f32.mrb[7].mxu0  ;;  %v2408_v21 = vld [vmem:[#allocation16 + $0x30] sm:$0xff]   ;;  %v1994_v23 = vld [vmem:[#allocation18] ss:$0 sm:$0xff] }
 0x47f   : > { %v961_v31 = vmul.f32 %v3499_v29, %v955_v28  ;;  %v970_v32 = vmul.f32 %v960_v27, %v960_v27 }
 0x481   : > { %v962_v33 = vadd.f32 %v961_v31, %v960_v27  ;;  %v971_v34 = vmul.f32 %v961_v31, %v961_v31 }
 0x483   : > { %v963_v35 = vrot.slane %v962_v33, 4  ;;  %v972_v36 = vadd.f32 %v971_v34, %v970_v32 }
 0x485   : > { %v964_v37 = vadd.f32 %v963_v35, %v962_v33  ;;  %v973_v38 = vrot.slane %v972_v36, 4 }
 0x487   : > { %v965_v39 = vrot.slane %v964_v37, 2  ;;  %v974_v40 = vadd.f32 %v973_v38, %v972_v36 }
 0x489   : > { %v966_v41 = vadd.f32 %v965_v39, %v964_v37  ;;  %v975_v42 = vrot.slane %v974_v40, 2 }
 0x48b   : > { %v967_v43 = vrot.slane %v966_v41, 1  ;;  %v976_v44 = vadd.f32 %v975_v42, %v974_v40 }
 0x48d   : > { %v968_v45 = vadd.f32 %v967_v43, %v966_v41  ;;  %v977_v46 = vrot.slane %v976_v44, 1 }
 0x48f   : > { %v969_v47 = vmul.f32 %v968_v45, %v3503_v48  ;;  %v978_v49 = vadd.f32 %v977_v46, %v976_v44 }
 0x491   : > { %v979_v50 = vmul.f32 %v978_v49, %v3503_v48  ;;  %v980_v51 = vmul.f32 %v969_v47, %v969_v47 }
 0x493   : > { %v981_v52 = vsub.f32 %v979_v50, %v980_v51 }
 0x495   : > { %v982_v53 = vmax.f32 %v981_v52, 0.0 }
 0x497   : > { %v983_v54 = vadd.f32 1e-05, %v982_v53 }
 0x499   : > { %2430 = vrsqrt.f32 %v983_v54 }
 0x4a3   : > { %v2431_v56 = vpop.eup %2430 }
 0x4a4   : > { %v985_v57 = vmul.f32 %v2431_v56, %v958_v55 }
 0x4a6   : > { %v986_v60 = vmul.f32 %v985_v57, %v969_v47  ;;  %v991_v61 = vrot.slane %v985_v57, %v3507_v59  ;;  %v1155_v57 = vld [vmem:[#allocation18 + $0x1] sm:$0x1] }
 0x4a8   : > { %v987_v62 = vsub.f32 %v959_v58, %v986_v60  ;;  %v992_v63 = vmul.f32 %v991_v61, %v960_v27  ;;  %v993_v1 = vmul.f32 %v991_v61, %v961_v31  ;;  %v1156_v61 = vld [vmem:[#allocation18 + $0x2] sm:$0x1] }
 0x4aa   : > { %v997_v2 = vrot.slane %v987_v62, %v3507_v59 }
 0x4ac   : > { %v999_v4 = vadd.f32 %v997_v2, %v993_v1  ;;  %v998_v5 = vadd.f32 %v997_v2, %v992_v63 }
 0x4ae   : > { %v1000_v6 = vmax.f32 %v998_v5, 0.0  ;;  %v1001_v7 = vmax.f32 %v999_v4, 0.0 }
 0x4b0   : > { %v3527_v8 = vpack.c.bf16 %v1001_v7, %v1000_v6 }
 0x4b2   : > { %2138 = vmatmul.mubr.bf16.vlgmr.msra.gmra.mrb[4].mxu1 %v3527_v8 }
 0x4b3   : > { %2163 = vmatprep.mubr.msk.bf16.mxu1 %vm2927_vm0, %v2926_v0  ;;  %2148 = vmatpush3.bf16.msra.mxu1 %v2402_v17  ;;  %v2417_v17 = vld [vmem:[#allocation22 + $0x18] sm:$0xff]  }
 0x4b4   : > { %2149 = vmatprep.subr.bf16.mxu1 %v2926_v0 }
 0x4b7   : > { %2150 = vmatpush3.bf16.msra.mxu1 %v2403_v18  ;;  %v2419_v18 = vld [vmem:[#allocation22 + $0x20] sm:$0xff]  }
 0x4b8   : > { %2151 = vmatprep.subr.bf16.mxu1 %v2926_v0 }
 0x4bb   : > { %2152 = vmatpush3.bf16.msra.mxu1 %v2404_v19 }
 0x4bc   : > { %2153 = vmatprep.subr.bf16.mxu1 %v2926_v0 }
 0x585   : > { %v1101_v9 = vpop.f32.mrb[4].mxu1 }
 0x586   : > { %v2139_v10 = vpop.f32.mrb[5].mxu1 }
 0x587   : > { %v1104_v12 = vpop.f32.mrb[6].mxu1 }
 0x588   : > { %v1108_v14 = vpack.c.bf16 %v1104_v12, %v1101_v9  ;;  %v2140_v15 = vpop.f32.mrb[7].mxu1 }
 0x589   : > { %v2413_v15 = vld [vmem:[#allocation22 + $0x8] sm:$0xff]  }
 0x58a   : > { %2142 = vmatpush3.bf16.msra.mxu0 %v1108_v14  ;;  %v2411_v14 = vld [vmem:[#allocation22] sm:$0xff]  }
 0x58b   : > { %2167 = vmatprep.subr.bf16.mxu0 %v2926_v0 }
 0x58d   : > { %2144 = vmatmul.mubr.msk.bf16.vlgmr.msra.gmra.mrb[8].mxu0 %vm757_vm3, %v3479_v11  ;;  %v2405_v11 = vld [vmem:[#allocation16 + $0x18] sm:$0xff]  }
 0x58e   : > { %2168 = vmatpush3.bf16.msra.mxu0 %v1356_v16  ;;  %2169 = vmatprep.mubr.msk.bf16.mxu0 %vm2927_vm0, %v2926_v0  ;;  %v2415_v16 = vld [vmem:[#allocation22 + $0x10] sm:$0xff]  }
 0x58f   : > { %2154 = vmatpush3.bf16.msra.mxu1 %v2405_v11  ;;  %v2421_v11 = vld [vmem:[#allocation22 + $0x28] sm:$0xff]  }
 0x590   : > { %2155 = vmatprep.subr.bf16.mxu1 %v2926_v0 }
 0x593   : > { %2156 = vmatpush3.bf16.msra.mxu1 %v2406_v20 }
 0x594   : > { %2157 = vmatprep.subr.bf16.mxu1 %v2926_v0 }
 0x595   : > { %2170 = vmatmul.mubr.msk.bf16.vlgmr.msra.gmra.mrb[12].mxu0 %vm697_vm2, %v3467_v3  ;;  %v2407_v3 = vld [vmem:[#allocation16 + $0x28] sm:$0xff]  }
 0x596   : > { %1435 = vmatprep.mubr.bf16.mxu0 %v2928_v13  ;;  %v2412_v13 = vld [vmem:[#allocation21 + $0x8] sm:$0xff]  }
 0x597   : > { %2158 = vmatpush3.bf16.msra.mxu1 %v2407_v3 }
 0x598   : > { %2159 = vmatprep.subr.bf16.mxu1 %v2926_v0 }
 0x59b   : > { %2160 = vmatpush3.bf16.msra.mxu1 %v2408_v21 }
 0x59c   : > { %2161 = vmatprep.subr.bf16.mxu1 %v2926_v0 }
 0x59f   : > { %2162 = vmatpush3.bf16.msra.mxu1 %v2409_v22 }
 0x5a0   : > { %2199 = vmatprep.subr.bf16.mxu1 %v2926_v0 }
 0x660   : > { %v1148_v24 = vpop.f32.mrb[8].mxu0 }
 0x661   : > { %v1149_v26 = vadd.f32 %v1994_v23, %v1148_v24  ;;  %v2145_v27 = vpop.f32.mrb[9].mxu0  ;;  %v1996_v24 = vld [vmem:[#allocation18 + $0x3] ss:$0 sm:$0xff] }
 0x662   : > { %v1151_v28 = vpop.f32.mrb[10].mxu0 }
 0x663   : > { %v1157_v30 = vmul.f32 %v3496_v25, %v1149_v26  ;;  %v1152_v31 = vadd.f32 %v1994_v23, %v1151_v28  ;;  %v2146_v32 = vpop.f32.mrb[11].mxu0  ;;  %v2423_v23 = vld [vmem:[#allocation22 + $0x30] sm:$0xff]  }
 0x665   : > { %v1158_v33 = vmul.f32 %v3499_v29, %v1152_v31  ;;  %v1167_v34 = vmul.f32 %v1157_v30, %v1157_v30 }
 0x667   : > { %v1159_v35 = vadd.f32 %v1158_v33, %v1157_v30  ;;  %v1168_v36 = vmul.f32 %v1158_v33, %v1158_v33 }
 0x668   : > { %v3561_v19 = vpop.f32.mrb[12].mxu0 }
 0x669   : > { %v1160_v37 = vrot.slane %v1159_v35, 4  ;;  %v1169_v38 = vadd.f32 %v1168_v36, %v1167_v34  ;;  %v2171_v20 = vpop.f32.mrb[13].mxu0 }
 0x66a   : > { %v3563_v3 = vpop.f32.mrb[14].mxu0 }
 0x66b   : > { %v1161_v39 = vadd.f32 %v1160_v37, %v1159_v35  ;;  %v1170_v40 = vrot.slane %v1169_v38, 4  ;;  %v1444_v21 = vpack.c.bf16 %v3563_v3, %v3561_v19  ;;  %v2172_v22 = vpop.f32.mrb[15].mxu0 }
 0x66d   : > { %v1162_v41 = vrot.slane %v1161_v39, 2  ;;  %v1171_v42 = vadd.f32 %v1170_v40, %v1169_v38 }
 0x66f   : > { %v1163_v43 = vadd.f32 %v1162_v41, %v1161_v39  ;;  %v1172_v44 = vrot.slane %v1171_v42, 2 }
 0x671   : > { %v1164_v45 = vrot.slane %v1163_v43, 1  ;;  %v1173_v46 = vadd.f32 %v1172_v44, %v1171_v42 }
 0x673   : > { %v1165_v47 = vadd.f32 %v1164_v45, %v1163_v43  ;;  %v1174_v49 = vrot.slane %v1173_v46, 1 }
 0x675   : > { %v1166_v50 = vmul.f32 %v1165_v47, %v3503_v48  ;;  %v1175_v51 = vadd.f32 %v1174_v49, %v1173_v46 }
 0x677   : > { %v1176_v52 = vmul.f32 %v1175_v51, %v3503_v48  ;;  %v1177_v53 = vmul.f32 %v1166_v50, %v1166_v50 }
 0x679   : > { %v1178_v54 = vsub.f32 %v1176_v52, %v1177_v53 }
 0x67b   : > { %v1179_v55 = vmax.f32 %v1178_v54, 0.0 }
 0x67d   : > { %v1180_v56 = vadd.f32 1e-05, %v1179_v55 }
 0x67f   : > { %2432 = vrsqrt.f32 %v1180_v56  ;;  %v1310_v56 = vld [vmem:[#allocation18 + $0x4] sm:$0x1] }
 0x689   : > { %v2433_v58 = vpop.eup %2432 }
 0x68a   : > { %v1182_v60 = vmul.f32 %v2433_v58, %v1155_v57 }
 0x68c   : > { %v1183_v62 = vmul.f32 %v1182_v60, %v1166_v50  ;;  %v1188_v63 = vrot.slane %v1182_v60, %v3507_v59  ;;  %v1311_v60 = vld [vmem:[#allocation18 + $0x5] sm:$0x1] }
 0x68e   : > { %v1184_v1 = vsub.f32 %v1156_v61, %v1183_v62  ;;  %v1189_v2 = vmul.f32 %v1188_v63, %v1157_v30  ;;  %v1190_v4 = vmul.f32 %v1188_v63, %v1158_v33 }
 0x690   : > { %v1194_v5 = vrot.slane %v1184_v1, %v3507_v59 }
 0x692   : > { %v1196_v6 = vadd.f32 %v1194_v5, %v1190_v4  ;;  %v1195_v7 = vadd.f32 %v1194_v5, %v1189_v2 }
 0x694   : > { %v1197_v9 = vmax.f32 %v1195_v7, 0.0  ;;  %v1198_v10 = vmax.f32 %v1196_v6, 0.0 }
 0x696   : > { %v1215_v12 = vpack.c.bf16 %v1198_v10, %v1197_v9  ;;  %v688_v10 = vld [vmem:[%s569_s1] sm:$0x1] }
 0x698   : > { %2164 = vmatmul.mubr.bf16.vlgmr.msra.gmra.mrb[8].mxu1 %v1215_v12  ;;  %v2410_v12 = vld [vmem:[#allocation21] sm:$0xff]  }
 0x699   : > { %2215 = vmatprep.mubr.msk.bf16.mxu1 %vm2927_vm0, %v2926_v0  ;;  %2200 = vmatpush3.bf16.msra.mxu1 %v2411_v14  ;;  %v2418_v14 = vld [vmem:[#allocation21 + $0x20] sm:$0xff]  }
 0x69a   : > { %2201 = vmatprep.subr.bf16.mxu1 %v2926_v0 }
 0x69d   : > { %2202 = vmatpush3.bf16.msra.mxu1 %v2413_v15  ;;  %v2420_v15 = vld [vmem:[#allocation21 + $0x28] sm:$0xff]  }
 0x69e   : > { %2203 = vmatprep.subr.bf16.mxu1 %v2926_v0 }
 0x6a1   : > { %2204 = vmatpush3.bf16.msra.mxu1 %v2415_v16  ;;  %v2422_v16 = vld [vmem:[#allocation21 + $0x30] sm:$0xff]  }
 0x6a2   : > { %2205 = vmatprep.subr.bf16.mxu1 %v2926_v0 }
 0x6a5   : > { %2206 = vmatpush3.bf16.msra.mxu1 %v2417_v17  ;;  %v2424_v17 = vld [vmem:[#allocation21 + $0x38] sm:$0xff]  }
 0x6a6   : > { %2207 = vmatprep.subr.bf16.mxu1 %v2926_v0 }
 0x6a9   : > { %2208 = vmatpush3.bf16.msra.mxu1 %v2419_v18  ;;  %v2425_v18 = vld [vmem:[#allocation22 + $0x38] sm:$0xff]  }
 0x6aa   : > { %2209 = vmatprep.subr.bf16.mxu1 %v2926_v0 }
 0x6ad   : > { %2210 = vmatpush3.bf16.msra.mxu1 %v2421_v11 }
 0x6ae   : > { %2211 = vmatprep.subr.bf16.mxu1 %v2926_v0 }
 0x6b1   : > { %2212 = vmatpush3.bf16.msra.mxu1 %v2423_v23 }
 0x6b2   : > { %2213 = vmatprep.subr.bf16.mxu1 %v2926_v0 }
 0x6b5   : > { %2214 = vmatpush3.bf16.msra.mxu1 %v2425_v18 }
 0x76b   : > { %v1303_v26 = vpop.f32.mrb[8].mxu1 }
 0x76c   : > { %v1304_v27 = vadd.f32 %v1996_v24, %v1303_v26  ;;  %v2165_v28 = vpop.f32.mrb[9].mxu1 }
 0x76d   : > { %v1306_v30 = vpop.f32.mrb[10].mxu1 }
 0x76e   : > { %v1312_v31 = vmul.f32 %v3496_v25, %v1304_v27  ;;  %v1307_v32 = vadd.f32 %v1996_v24, %v1306_v30  ;;  %v2166_v33 = vpop.f32.mrb[11].mxu1 }
 0x770   : > { %v1313_v34 = vmul.f32 %v3499_v29, %v1307_v32  ;;  %v1322_v35 = vmul.f32 %v1312_v31, %v1312_v31 }
 0x772   : > { %v1314_v36 = vadd.f32 %v1313_v34, %v1312_v31  ;;  %v1323_v37 = vmul.f32 %v1313_v34, %v1313_v34 }
 0x774   : > { %v1315_v38 = vrot.slane %v1314_v36, 4  ;;  %v1324_v39 = vadd.f32 %v1323_v37, %v1322_v35 }
 0x776   : > { %v1316_v40 = vadd.f32 %v1315_v38, %v1314_v36  ;;  %v1325_v41 = vrot.slane %v1324_v39, 4 }
 0x778   : > { %v1317_v42 = vrot.slane %v1316_v40, 2  ;;  %v1326_v43 = vadd.f32 %v1325_v41, %v1324_v39 }
 0x77a   : > { %v1318_v44 = vadd.f32 %v1317_v42, %v1316_v40  ;;  %v1327_v45 = vrot.slane %v1326_v43, 2 }
 0x77c   : > { %v1319_v46 = vrot.slane %v1318_v44, 1  ;;  %v1328_v47 = vadd.f32 %v1327_v45, %v1326_v43 }
 0x77e   : > { %v1320_v49 = vadd.f32 %v1319_v46, %v1318_v44  ;;  %v1329_v50 = vrot.slane %v1328_v47, 1 }
 0x780   : > { %v1321_v25 = vmul.f32 %v1320_v49, %v3503_v48  ;;  %v1330_v51 = vadd.f32 %v1329_v50, %v1328_v47 }
 0x782   : > { %v1331_v29 = vmul.f32 %v1330_v51, %v3503_v48  ;;  %v1332_v52 = vmul.f32 %v1321_v25, %v1321_v25 }
 0x784   : > { %v1333_v53 = vsub.f32 %v1331_v29, %v1332_v52 }
 0x786   : > { %v1334_v54 = vmax.f32 %v1333_v53, 0.0 }
 0x788   : > { %v1335_v55 = vadd.f32 1e-05, %v1334_v54 }
 0x78a   : > { %2434 = vrsqrt.f32 %v1335_v55 }
 0x794   : > { %v2435_v57 = vpop.eup %2434 }
 0x795   : > { %v1337_v58 = vmul.f32 %v2435_v57, %v1310_v56 }
 0x797   : > { %v1343_v61 = vrot.slane %v1337_v58, %v3507_v59  ;;  %v1338_v62 = vmul.f32 %v1337_v58, %v1321_v25 }
 0x799   : > { %v1345_v63 = vmul.f32 %v1343_v61, %v1313_v34  ;;  %v1339_v1 = vsub.f32 %v1311_v60, %v1338_v62  ;;  %v1344_v2 = vmul.f32 %v1343_v61, %v1312_v31 }
 0x79b   : > { %v1349_v4 = vrot.slane %v1339_v1, %v3507_v59  ;;  %v2414_v59 = vld [vmem:[#allocation21 + $0x10] sm:$0xff]  }
 0x79d   : > { %v1350_v5 = vadd.f32 %v1349_v4, %v1344_v2  ;;  %v1351_v48 = vadd.f32 %v1349_v4, %v1345_v63 }
 0x79f   : > { %v1352_v6 = vmax.f32 %v1350_v5, 0.0  ;;  %v1353_v7 = vmax.f32 %v1351_v48, 0.0 }
 0x7a1   : > { %v1399_v9 = vpack.c.bf16 %v1353_v7, %v1352_v6 }
 0x7a3   : > { %1403 = vmatprep.subr.bf16.mxu0 %v1399_v9 }
 0x7a4   : > { %1404 = vmatpush1.bf16.msra.mxu0 %v3527_v8  ;;  %v2416_v8 = vld [vmem:[#allocation21 + $0x18] sm:$0xff]  }
 0x7a5   : > { %2173 = vmatprep.subr.bf16.mxu0 %v2926_v0 }
 0x7a7   : > { %2006 = vmatmul.mubr.msk.bf16.vlgmr.msra.gmra.mrb[16].mxu0 %vm757_vm3, %v688_v10 }
 0x7a8   : > { %2174 = vmatpush3.bf16.msra.mxu0 %v2410_v12  ;;  %2189 = vmatprep.mubr.msk.bf16.mxu0 %vm2927_vm0, %v2926_v0 }
 0x7a9   : > { %2175 = vmatprep.subr.bf16.mxu0 %v2926_v0 }
 0x7ac   : > { %2176 = vmatpush3.bf16.msra.mxu0 %v2412_v13 }
 0x7ad   : > { %2177 = vmatprep.subr.bf16.mxu0 %v2926_v0 }
 0x7b0   : > { %2178 = vmatpush3.bf16.msra.mxu0 %v2414_v59 }
 0x7b1   : > { %2179 = vmatprep.subr.bf16.mxu0 %v2926_v0 }
 0x7b4   : > { %2180 = vmatpush3.bf16.msra.mxu0 %v2416_v8 }
 0x7b5   : > { %2181 = vmatprep.subr.bf16.mxu0 %v2926_v0 }
 0x7b8   : > { %2182 = vmatpush3.bf16.msra.mxu0 %v2418_v14 }
 0x7b9   : > { %2183 = vmatprep.subr.bf16.mxu0 %v2926_v0 }
 0x7bc   : > { %2184 = vmatpush3.bf16.msra.mxu0 %v2420_v15 }
 0x7bd   : > { %2185 = vmatprep.subr.bf16.mxu0 %v2926_v0 }
 0x7c0   : > { %2186 = vmatpush3.bf16.msra.mxu0 %v2422_v16 }
 0x7c1   : > { %2187 = vmatprep.subr.bf16.mxu0 %v2926_v0 }
 0x7c4   : > { %2188 = vmatpush3.bf16.msra.mxu0 %v2424_v17 }
 0x7c5   : > { %2193 = vmatprep.subr.bf16.mxu0 %v2926_v0 }
 0x87a   : > { %v1437_v11 = vpop.f32.mrb[16].mxu0 }
 0x87b   : > { %v1461_v20 = vpack.c.bf16 %v1437_v11, %v1437_v11  ;;  %v1439_v22 = vpop.f32.mrb[17].mxu0 }
 0x87c   : > { %v1606_v23 = vpack.c.bf16 %v1439_v22, %v1439_v22  ;;  %v1441_v24 = vpop.f32.mrb[18].mxu0 }
 0x87d   : > { %2190 = vmatmul.mubr.bf16.vlgmr.msra.gmra.mrb[20].mxu0 %v1461_v20  ;;  %v1442_v26 = vpop.f32.mrb[19].mxu0 }
 0x87e   : > { %2194 = vmatpush3.bf16.msra.mxu0 %v1444_v21  ;;  %2216 = vmatmul.mubr.bf16.vlgmr.msra.gmra.mrb[12].mxu1 %v1606_v23  ;;  %v2024_v21 = vld [vmem:[#allocation24] ss:$0 sm:$0xff] }
 0x87f   : > { %2195 = vmatprep.mubr.msk.bf16.mxu0 %vm2927_vm0, %v2926_v0 }
 0x885   : > { %2196 = vmatmul.mubr.msk.bf16.vlgmr.msra.gmra.mrb[24].mxu0 %vm757_vm3, %v688_v10 }
 0x950   : > { %v1544_v27 = vpop.f32.mrb[20].mxu0 }
 0x951   : > { %v1689_v28 = vpop.f32.mrb[12].mxu1  ;;  %v2191_v30 = vpop.f32.mrb[21].mxu0 }
 0x952   : > { %v2217_v31 = vpop.f32.mrb[13].mxu1  ;;  %v1547_v32 = vpop.f32.mrb[22].mxu0 }
 0x953   : > { %v1692_v33 = vpop.f32.mrb[14].mxu1  ;;  %v2192_v34 = vpop.f32.mrb[23].mxu0 }
 0x954   : > { %v2218_v35 = vpop.f32.mrb[15].mxu1 }
 0x958   : > { %v1584_v36 = vpop.f32.mrb[24].mxu0 }
 0x959   : > { %v1585_v19 = vadd.f32 %v1584_v36, %v1544_v27  ;;  %v2197_v3 = vpop.f32.mrb[25].mxu0 }
 0x95a   : > { %v1587_v37 = vpop.f32.mrb[26].mxu0 }
 0x95b   : > { %v1695_v0 = vadd.f32 %v1689_v28, %v1585_v19  ;;  %v2198_v38 = vpop.f32.mrb[27].mxu0 }
 0x95d   : > { %v1703_v39 = vadd.f32 %v2024_v21, %v1695_v0 }
 0x95f   : > { %v1706_v40 = vcombine.low %v1439_v22, %v1703_v39 }
 0x961   : > { %2025 = vst.sshfl [vmem:[%s669_s7] sm:$0x33 pattern:$0x76325410] %v1706_v40 }
 0x962   : > { %2829 = shalt.err (!%p2826_p13)
}
 0x963   : > { %s2830_s21 = scalar_lea.hbm %s3601_s20, 64  ;;  %s2834_s15 = scalar_lea.hbm %s3748_s14, 128 }
 0x964   : > { %p2831_p0 = scmp.ne.s32.totalorder %s3601_s20, %s2830_s21  ;;  %p2835_p1 = scmp.lt.u32.totalorder %s3601_s20, %s3748_s14 }
 0x965   : > { %p2836_p2 = scmp.lt.u32.totalorder %s2834_s15, %s2830_s21  ;;  %p2838_p3 = scmp.lt.u32.totalorder %s2830_s21, %s3601_s20 }
 0x966   : > { %p2832_p11 = pnand %p2831_p0, %p3749_p5 }
 0x967   : > { %p2837_p8 = por %p2836_p2, %p2835_p1 }
 0x968   : > { %p2833_p12 = pneg %p2832_p11 }
 0x969   : > { %p2839_p9 = por %p2838_p3, %p2837_p8 }
 0x96b   : > { %p2840_p6 = pnand %p2839_p9, %p2833_p12 }
 0x96d   : > { %2843 = shalt.err (!%p2840_p6)
}
 0x96e   : > { %2267 = dma.vmem_to_hbm [thread:$0]  (%p3749_p5), %s3603_s27, 64, %s3601_s20, %s1717_s18  }
 0x96f PF: > { %s3750_s1 = sld [smem:[#allocation35_spill]]  ;;  %s3751_s12 = sld [smem:[#allocation40_spill]] }
 0x970   : > { %p3753_p10 = scmp.ge.s32.totalorder %s2908_s0, 2 }
 0x975   : > { %s1743_s26 = sand.u32 1, %s3750_s1   ;;  %p3752_p7 = scmp.ne.s32.totalorder %s3751_s12, 0 }
 0x976   : > { %s1744_s13 = scalar_lea.sflag [#allocation6], %s1743_s26 }
 0x977   : > { %p2311_p4 = pnand %p3753_p10, %p3752_p7 }
 0x979   : > { %2891 = dma.done.wait (!%p2311_p4), %s1744_s13, 64  }
 0x97a   : > { %2893 = vsyncadd (!%p2311_p4), %s1744_s13, 4294967232  ;;  %s3754_s0 = sld [smem:[#allocation38_spill]]  ;;  %s3755_s9 = sld [smem:[#allocation36_spill]] }
 0x97b   : > { %s3756_s25 = sld [smem:[#allocation39_spill]]  ;;  %s3757_s23 = smov %s2900_s24 }
 0x980   : > { %p39_p13 = scmp.ge.s32.totalorder %s3754_s0, 4   ;;  %s3758_s24 = smov %s3755_s9 }
 0x982   :  { %41 = sbr.rel (!%p39_p13) target bundleno = 32 (0x20), region = 181 }
 0x989   :  { %1749 = vsyncpa [#allocation5], 1 }
 0x98a   :  { %1751 = vsyncpa [#allocation5 + $0x1], 1 }
 0x98b   :  { %1752 = vsyncpa [#allocation8], 1 }
 0x98c   :  { %1754 = vsyncpa [#allocation8 + $0x1], 1 }
 0x98d   :  { %1755 = vsyncpa [#allocation11], 1 }
 0x98e   :  { %1756 = vsyncpa [#allocation14], 1 }
 0x98f   :  { %1757 = vsyncpa [#allocation17], 1 }
 0x990   :  { %1758 = vsyncpa [#allocation20], 1 }
 0x991   :  { %1759 = vsyncpa [#allocation23], 1 }
 0x992   :  { %1760 = vsyncpa [#allocation6], 1 }
 0x993   :  { %1762 = vsyncpa [#allocation6 + $0x1], 1 }

</bundles_post_ra>
